<compile_context>
chip_gen: v7x
topology: tpu7x:2x2x1
jax: 0.10.0
libtpu: 0.0.40
codegen_flags: <defaults>
</compile_context>

<pallas_src>
import functools

import numpy as np
import jax
import jax.numpy as jnp
from jax import lax
from jax.experimental import pallas as pl
from jax.experimental.pallas import tpu as pltpu

# ----- cfg.TRAIN constants (standard Faster R-CNN RPN defaults) -------------
RPN_NEGATIVE_OVERLAP = 0.3
RPN_POSITIVE_OVERLAP = 0.7
RPN_CLOBBER_POSITIVES = False
RPN_FG_FRACTION = 0.5
RPN_BATCHSIZE = 256
RPN_BBOX_INSIDE_WEIGHT = 1.0
RPN_POSITIVE_WEIGHT = -1.0


# ----- generate_anchors (deterministic, standard py-faster-rcnn) ------------
def _whctrs(anchor):
    w = anchor[2] - anchor[0] + 1
    h = anchor[3] - anchor[1] + 1
    x_ctr = anchor[0] + 0.5 * (w - 1)
    y_ctr = anchor[1] + 0.5 * (h - 1)
    return w, h, x_ctr, y_ctr


def _mkanchors(ws, hs, x_ctr, y_ctr):
    ws = ws[:, np.newaxis]
    hs = hs[:, np.newaxis]
    return np.hstack((x_ctr - 0.5 * (ws - 1), y_ctr - 0.5 * (hs - 1),
                      x_ctr + 0.5 * (ws - 1), y_ctr + 0.5 * (hs - 1)))


def _ratio_enum(anchor, ratios):
    w, h, x_ctr, y_ctr = _whctrs(anchor)
    size = w * h
    size_ratios = size / ratios
    ws = np.round(np.sqrt(size_ratios))
    hs = np.round(ws * ratios)
    return _mkanchors(ws, hs, x_ctr, y_ctr)


def _scale_enum(anchor, scales):
    w, h, x_ctr, y_ctr = _whctrs(anchor)
    ws = w * scales
    hs = h * scales
    return _mkanchors(ws, hs, x_ctr, y_ctr)


def generate_anchors(base_size=16, ratios=np.array([0.5, 1, 2]),
                     scales=2 ** np.arange(3, 6)):
    base_anchor = np.array([1, 1, base_size, base_size], dtype=np.float64) - 1
    ratio_anchors = _ratio_enum(base_anchor, ratios)
    anchors = np.vstack([_scale_enum(ratio_anchors[i, :], scales)
                         for i in range(ratio_anchors.shape[0])])
    return anchors.astype(np.float32)


# ----- Pallas kernel: the hot path -------------------------------------------
# Inputs:
#   im_ref   : (3,)        SMEM  [height, width, scale]
#   anc_ref  : (4, S, 128) VMEM  anchors coordinate-major, sublane-packed
#   tube_ref : (G*7,)      SMEM  gt tubes flattened [x1,y1,t1,x2,y2,t2,label]*G
#   roi_ref  : (T*G*5,)    SMEM  gt rois flattened [x1,y1,x2,y2,label] per (t,g)
# Outputs:
#   misc_ref : (3, S, 128) planes: [tube_labels, inside_w, outside_w]
#   tgt_ref  : (4, T, S, 128) planes: [dx, dy, dw, dh] x T
def _anchor_target_kernel(im_ref, anc_ref, tube_ref, roi_ref, misc_ref, tgt_ref,
                          *, G, T):
    ax1 = anc_ref[0]                                # (S, 128)
    ay1 = anc_ref[1]
    ax2 = anc_ref[2]
    ay2 = anc_ref[3]

    # long(im_info) in the reference -> floor
    im_h = jnp.floor(im_ref[0])
    im_w = jnp.floor(im_ref[1])
    # _allowed_border == 0; padded dummy anchors have x1 = -1 -> outside.
    inside = (ax1 >= 0.0) & (ay1 >= 0.0) & (ax2 < im_w) & (ay2 < im_h)

    area_a = (ax2 - ax1 + 1.0) * (ay2 - ay1 + 1.0)  # (S, 128)

    # ---- bbox_overlaps_time: spatial IoU anchors vs gt-tube extents -------
    # Static loop over the (tiny) gt set; per-gt IoU is computed with scalar
    # broadcasts from SMEM and folded into running max / argmax / keep_cnt
    # accumulators (no (G, Np) matrix is ever materialized).
    max_ov = jnp.full(ax1.shape, -jnp.inf, dtype=jnp.float32)
    argmax = jnp.zeros(ax1.shape, dtype=jnp.float32)
    keep_cnt = jnp.zeros(ax1.shape, dtype=jnp.float32)

    for g in range(G):                              # static, small
        gx1 = tube_ref[7 * g + 0]
        gy1 = tube_ref[7 * g + 1]
        gx2 = tube_ref[7 * g + 3]
        gy2 = tube_ref[7 * g + 4]
        iw = jnp.maximum(jnp.minimum(ax2, gx2) - jnp.maximum(ax1, gx1) + 1.0, 0.0)
        ih = jnp.maximum(jnp.minimum(ay2, gy2) - jnp.maximum(ay1, gy1) + 1.0, 0.0)
        inter = iw * ih
        area_g = (gx2 - gx1 + 1.0) * (gy2 - gy1 + 1.0)
        # exact divide: IoU feeds 0.3/0.7 threshold compares (EUP, hidden)
        ov = inter / (area_a + area_g - inter)
        # exclude anchors outside the image (replaces index_select by inds_inside)
        ov = jnp.where(inside, ov, -1.0)

        upd = ov > max_ov                           # strict > => first-max index
        max_ov = jnp.where(upd, ov, max_ov)
        argmax = jnp.where(upd, float(g), argmax)

        gt_max = jnp.max(ov, keepdims=True)         # (1, 1) per-gt max over anchors
        gt_max = jnp.where(gt_max == 0.0, 1e-5, gt_max)
        keep_cnt = keep_cnt + (ov == gt_max).astype(jnp.float32)

    neg1 = jnp.full(ax1.shape, -1.0, dtype=jnp.float32)
    labels = neg1
    if not RPN_CLOBBER_POSITIVES:
        labels = jnp.where(inside & (max_ov < RPN_NEGATIVE_OVERLAP), 0.0, labels)
    labels = jnp.where(inside & (keep_cnt > 0.0), 1.0, labels)
    labels = jnp.where(inside & (max_ov >= RPN_POSITIVE_OVERLAP), 1.0, labels)
    if RPN_CLOBBER_POSITIVES:
        labels = jnp.where(inside & (max_ov < RPN_NEGATIVE_OVERLAP), 0.0, labels)
    # TODO(synk): fg/bg random subsampling (unseeded np.random.permutation in
    # the reference) is skipped; it only triggers when counts exceed
    # RPN_BATCHSIZE fractions.

    # rois_labels (only ever -1 or 0 in the reference)
    rois_labels = jnp.where(inside & (max_ov < RPN_NEGATIVE_OVERLAP), 0.0, neg1)
    num_examples = jnp.sum((rois_labels >= 0.0).astype(jnp.float32),
                           keepdims=True)           # (1, 1)
    # RPN_POSITIVE_WEIGHT < 0 branch; guarded against num_examples == 0
    neg_weight = 1.0 / jnp.maximum(num_examples, 1.0)

    inw = jnp.where(labels == 1.0, RPN_BBOX_INSIDE_WEIGHT, 0.0)     # (S, 128)
    outw = jnp.where(rois_labels == 0.0, neg_weight, 0.0)           # (S, 128)

    misc_ref[0] = labels
    misc_ref[1] = inw
    misc_ref[2] = outw

    # ---- bbox_transform_batch targets ---------------------------------------
    ex_w = ax2 - ax1 + 1.0
    ex_h = ay2 - ay1 + 1.0
    ex_cx = ax1 + 0.5 * ex_w
    ex_cy = ay1 + 0.5 * ex_h
    inv_ex_w = 1.0 / ex_w                           # hoisted, (S, 128)
    inv_ex_h = 1.0 / ex_h

    # one-hot masks of the assigned gt (shared across all frames)
    onehot = [(argmax == float(g)).astype(jnp.float32) for g in range(G)]

    # One-hot gather of the assigned gt roi per frame: scalar-broadcast MAC over
    # the tiny static G set.  (For large G this would become a single MXU matmul
    # of a (4T, G) gt-stat matrix against the one-hot, but at G ~ 2 the padded-K
    # matmul buys nothing.)
    for t in range(T):                              # static, small
        scx = jnp.zeros(ax1.shape, dtype=jnp.float32)
        scy = jnp.zeros(ax1.shape, dtype=jnp.float32)
        sw = jnp.zeros(ax1.shape, dtype=jnp.float32)
        sh = jnp.zeros(ax1.shape, dtype=jnp.float32)
        for g in range(G):
            base = (t * G + g) * 5
            rx1 = roi_ref[base + 0]
            ry1 = roi_ref[base + 1]
            rx2 = roi_ref[base + 2]
            ry2 = roi_ref[base + 3]
            gw = rx2 - rx1 + 1.0
            gh = ry2 - ry1 + 1.0
            gcx = rx1 + 0.5 * gw
            gcy = ry1 + 0.5 * gh
            m = onehot[g]
            scx = scx + gcx * m
            scy = scy + gcy * m
            sw = sw + gw * m
            sh = sh + gh * m

        dx = (scx - ex_cx) * inv_ex_w
        dy = (scy - ex_cy) * inv_ex_h
        dw = jnp.log(sw * inv_ex_w)
        dh = jnp.log(sh * inv_ex_h)

        # _unmap fill = 0 for outside anchors; direct per-plane stores (no
        # concatenate / zero-row padding).
        tgt_ref[0, t] = jnp.where(inside, dx, 0.0)
        tgt_ref[1, t] = jnp.where(inside, dy, 0.0)
        tgt_ref[2, t] = jnp.where(inside, dw, 0.0)
        tgt_ref[3, t] = jnp.where(inside, dh, 0.0)


def anchor_target_pallas(im_info3, anc_packed, tube_flat, roi_flat, *, G, T):
    _, S, L = anc_packed.shape
    out_shape = (
        jax.ShapeDtypeStruct((3, S, L), jnp.float32),       # labels / in_w / out_w
        jax.ShapeDtypeStruct((4, T, S, L), jnp.float32),    # bbox targets
    )
    kernel = functools.partial(_anchor_target_kernel, G=G, T=T)
    return pl.pallas_call(
        kernel,
        out_shape=out_shape,
        in_specs=[
            pl.BlockSpec(memory_space=pltpu.MemorySpace.SMEM),   # im_info (3,)
            pl.BlockSpec(memory_space=pltpu.MemorySpace.VMEM),   # anchors (4,S,128)
            pl.BlockSpec(memory_space=pltpu.MemorySpace.SMEM),   # gt tubes (G*7,)
            pl.BlockSpec(memory_space=pltpu.MemorySpace.SMEM),   # gt rois (T*G*5,)
        ],
        out_specs=(
            pl.BlockSpec(memory_space=pltpu.MemorySpace.VMEM),
            pl.BlockSpec(memory_space=pltpu.MemorySpace.VMEM),
        ),
    )(im_info3, anc_packed, tube_flat, roi_flat)


# ----- jitted forward (kernel + fused pre/post glue) -------------------------
@functools.partial(jax.jit, static_argnames=("N", "H", "W", "A", "T"))
def _forward_impl(im_info, anc_packed, gt_tubes, gt_rois, *, N, H, W, A, T):
    B_tube = gt_tubes.shape[0]
    im3 = im_info.astype(jnp.float32).reshape(-1)[:3]                 # (3,)
    tube_flat = gt_tubes[0].astype(jnp.float32).reshape(-1)           # (G*7,)
    roi_flat = gt_rois.astype(jnp.float32).reshape(-1)                # (T*G*5,)
    G = gt_tubes.shape[1]

    misc, tgt = anchor_target_pallas(im3, anc_packed, tube_flat, roi_flat,
                                     G=G, T=T)
    S, L = misc.shape[1], misc.shape[2]

    labels = misc[0].reshape(-1)[:N]                # (N,)
    in_w = misc[1].reshape(-1)[:N]
    out_w = misc[2].reshape(-1)[:N]
    tgt = tgt.reshape(4, T, S * L)[:, :, :N]        # (4, T, N)

    # --- glue: output reshapes (mirror torch view/permute) -------------------
    tube_labels = labels.reshape(B_tube, H, W, A).transpose(0, 3, 1, 2)
    tube_labels = tube_labels.reshape(B_tube, 1, A * H, W)

    bbox_targets = tgt.transpose(1, 2, 0)           # (T, N, 4)
    bbox_targets = bbox_targets.reshape(T, H, W, A * 4)
    bbox_targets = bbox_targets.transpose(0, 3, 1, 2).reshape(-1, H, W)

    in_w_full = jnp.broadcast_to(in_w[None, :, None], (T, N, 4))
    in_w_full = in_w_full.reshape(T, H, W, 4 * A)
    in_w_full = in_w_full.transpose(0, 3, 1, 2).reshape(-1, H, W)

    out_w_full = jnp.broadcast_to(out_w[None, :, None], (T, N, 4))
    out_w_full = out_w_full.reshape(T, H, W, 4 * A)
    out_w_full = out_w_full.transpose(0, 3, 1, 2).reshape(-1, H, W)

    return tube_labels, bbox_targets, in_w_full, out_w_full


# ----- Module wrapper --------------------------------------------------------
class AnchorTargetLayerPallas:
    def __init__(self, feat_stride, scales, ratios):
        self._feat_stride = feat_stride
        self._scales = scales
        self._anchors_np = generate_anchors(scales=np.array(scales),
                                            ratios=np.array(ratios))   # (A, 4)
        self._num_anchors = self._anchors_np.shape[0]
        self._allowed_border = 0
        self._cache = {}      # (H, W) -> (anchors packed (4, S, 128), N)

    def _get_anchors(self, H, W):
        key = (H, W)
        if key not in self._cache:
            shift_x = np.arange(0, W) * self._feat_stride
            shift_y = np.arange(0, H) * self._feat_stride
            sx, sy = np.meshgrid(shift_x, shift_y)
            shifts = np.vstack((sx.ravel(), sy.ravel(),
                                sx.ravel(), sy.ravel())).T            # (K, 4)
            all_anchors = (self._anchors_np[None, :, :] +
                           shifts[:, None, :].astype(np.float32)
                           ).reshape(-1, 4).astype(np.float32)        # (K*A, 4)
            N = all_anchors.shape[0]
            n_rows = int(np.ceil(N / 128.0))
            S = int(np.ceil(n_rows / 8.0) * 8)       # sublane-packed, tile aligned
            # pad with x1 = -1 dummy anchors (always "outside")
            anc = np.full((4, S * 128), -1.0, dtype=np.float32)
            anc[:, :N] = all_anchors.T
            anc_packed = anc.reshape(4, S, 128)      # (4, S, 128)
            self._cache[key] = (jnp.asarray(anc_packed), N)
        return self._cache[key]

    def __call__(self, inputs):
        rpn_cls_score, gt_tubes, im_info, gt_rois, num_boxes, time_limit = inputs
        # num_boxes is accepted (and ignored) exactly as in the reference layer.
        H, W = int(rpn_cls_score.shape[2]), int(rpn_cls_score.shape[3])
        A = self._num_anchors
        T = int(time_limit)                 # gt_rois_batch_size
        assert gt_tubes.shape[0] == 1, "reference layer's .expand() implies tube batch 1"

        anc_packed, N = self._get_anchors(H, W)

        outs = _forward_impl(im_info, anc_packed, gt_tubes, gt_rois,
                             N=N, H=H, W=W, A=A, T=T)
        return list(outs)


# ----- demo ------------------------------------------------------------------
if __name__ == "__main__":
    key = jax.random.PRNGKey(0)
    k1, k2, k3, k4 = jax.random.split(key, 4)

    feat_stride = 16
    scales = [2, 4]
    ratios = [0.5, 1.0, 2.0]
    A = len(scales) * len(ratios)
    B, H, W = 1, 7, 7
    T = 3                       # time_limit
    G = 2                       # gt tubes / gt rois per frame

    rpn_cls_score = jax.random.normal(key, (B, 2 * A, H, W), jnp.float32)

    # gt tubes: [x1, y1, t1, x2, y2, t2, label]
    xy1 = jax.random.uniform(k1, (G, 2), minval=5.0, maxval=50.0)
    wh = jax.random.uniform(k2, (G, 2), minval=25.0, maxval=60.0)
    xy2 = jnp.minimum(xy1 + wh, 111.0)
    gt_tubes = jnp.concatenate(
        [xy1[:, 0:1], xy1[:, 1:2], jnp.zeros((G, 1)),
         xy2[:, 0:1], xy2[:, 1:2], jnp.full((G, 1), float(T - 1)),
         jnp.ones((G, 1))], axis=1)[None].astype(jnp.float32)   # (1, G, 7)

    # gt rois per frame: [x1, y1, x2, y2, label]
    rxy1 = jax.random.uniform(k3, (T, G, 2), minval=5.0, maxval=50.0)
    rwh = jax.random.uniform(k4, (T, G, 2), minval=25.0, maxval=60.0)
    rxy2 = jnp.minimum(rxy1 + rwh, 111.0)
    gt_rois = jnp.concatenate([rxy1, rxy2, jnp.ones((T, G, 1))],
                              axis=-1).astype(jnp.float32)      # (T, G, 5)

    im_info = jnp.array([[112.0, 112.0, 1.0]], jnp.float32)
    num_boxes = jnp.array([G], jnp.int32)

    layer = AnchorTargetLayerPallas(feat_stride, scales, ratios)
    outs = layer((rpn_cls_score, gt_tubes, im_info, gt_rois, num_boxes, T))
    for o in outs:
        jax.block_until_ready(o)

    print("KERNEL_OK")
</pallas_src>

<mosaic_0001>
module attributes {stable_mosaic.version = 11 : i64} {
  func.func @_anchor_target_kernel(%arg0: memref<3xf32, #tpu.memory_space<smem>>, %arg1: memref<4x8x128xf32, #tpu.memory_space<vmem>>, %arg2: memref<14xf32, #tpu.memory_space<smem>>, %arg3: memref<30xf32, #tpu.memory_space<smem>>, %arg4: memref<3x8x128xf32, #tpu.memory_space<vmem>>, %arg5: memref<4x3x8x128xf32, #tpu.memory_space<vmem>>) attributes {dimension_semantics = [], scalar_prefetch = 0 : i64, scratch_operands = 0 : i64, tpu.core_type = #tpu.core_type<tc>} {
    %c0 = arith.constant 0 : index
    %c0_0 = arith.constant 0 : index
    %c0_1 = arith.constant 0 : index
    %0 = vector.load %arg1[%c0, %c0_0, %c0_1] : memref<4x8x128xf32, #tpu.memory_space<vmem>>, vector<1x8x128xf32>
    %1 = vector.shape_cast %0 : vector<1x8x128xf32> to vector<8x128xf32>
    %c1 = arith.constant 1 : index
    %c0_2 = arith.constant 0 : index
    %c0_3 = arith.constant 0 : index
    %2 = vector.load %arg1[%c1, %c0_2, %c0_3] : memref<4x8x128xf32, #tpu.memory_space<vmem>>, vector<1x8x128xf32>
    %3 = vector.shape_cast %2 : vector<1x8x128xf32> to vector<8x128xf32>
    %c2 = arith.constant 2 : index
    %c0_4 = arith.constant 0 : index
    %c0_5 = arith.constant 0 : index
    %4 = vector.load %arg1[%c2, %c0_4, %c0_5] : memref<4x8x128xf32, #tpu.memory_space<vmem>>, vector<1x8x128xf32>
    %5 = vector.shape_cast %4 : vector<1x8x128xf32> to vector<8x128xf32>
    %c3 = arith.constant 3 : index
    %c0_6 = arith.constant 0 : index
    %c0_7 = arith.constant 0 : index
    %6 = vector.load %arg1[%c3, %c0_6, %c0_7] : memref<4x8x128xf32, #tpu.memory_space<vmem>>, vector<1x8x128xf32>
    %7 = vector.shape_cast %6 : vector<1x8x128xf32> to vector<8x128xf32>
    %c0_8 = arith.constant 0 : index
    %8 = memref.load %arg0[%c0_8] : memref<3xf32, #tpu.memory_space<smem>>
    %9 = math.floor %8 : f32
    %c1_9 = arith.constant 1 : index
    %10 = memref.load %arg0[%c1_9] : memref<3xf32, #tpu.memory_space<smem>>
    %11 = math.floor %10 : f32
    %cst = arith.constant 0.000000e+00 : f32
    %12 = vector.broadcast %cst : f32 to vector<8x128xf32>
    %13 = arith.cmpf oge, %1, %12 : vector<8x128xf32>
    %cst_10 = arith.constant 0.000000e+00 : f32
    %14 = vector.broadcast %cst_10 : f32 to vector<8x128xf32>
    %15 = arith.cmpf oge, %3, %14 : vector<8x128xf32>
    %16 = arith.andi %13, %15 : vector<8x128xi1>
    %17 = vector.broadcast %11 : f32 to vector<8x128xf32>
    %18 = arith.cmpf olt, %5, %17 : vector<8x128xf32>
    %19 = arith.andi %16, %18 : vector<8x128xi1>
    %20 = vector.broadcast %9 : f32 to vector<8x128xf32>
    %21 = arith.cmpf olt, %7, %20 : vector<8x128xf32>
    %22 = arith.andi %19, %21 : vector<8x128xi1>
    %23 = arith.subf %5, %1 : vector<8x128xf32>
    %cst_11 = arith.constant 1.000000e+00 : f32
    %24 = vector.broadcast %cst_11 : f32 to vector<8x128xf32>
    %25 = arith.addf %23, %24 : vector<8x128xf32>
    %26 = arith.subf %7, %3 : vector<8x128xf32>
    %cst_12 = arith.constant 1.000000e+00 : f32
    %27 = vector.broadcast %cst_12 : f32 to vector<8x128xf32>
    %28 = arith.addf %26, %27 : vector<8x128xf32>
    %29 = arith.mulf %25, %28 : vector<8x128xf32>
    %cst_13 = arith.constant 0xFF800000 : f32
    %30 = vector.broadcast %cst_13 : f32 to vector<8x128xf32>
    %cst_14 = arith.constant 0.000000e+00 : f32
    %31 = vector.broadcast %cst_14 : f32 to vector<8x128xf32>
    %cst_15 = arith.constant 0.000000e+00 : f32
    %32 = vector.broadcast %cst_15 : f32 to vector<8x128xf32>
    %c0_16 = arith.constant 0 : index
    %33 = memref.load %arg2[%c0_16] : memref<14xf32, #tpu.memory_space<smem>>
    %c1_17 = arith.constant 1 : index
    %34 = memref.load %arg2[%c1_17] : memref<14xf32, #tpu.memory_space<smem>>
    %c3_18 = arith.constant 3 : index
    %35 = memref.load %arg2[%c3_18] : memref<14xf32, #tpu.memory_space<smem>>
    %c4 = arith.constant 4 : index
    %36 = memref.load %arg2[%c4] : memref<14xf32, #tpu.memory_space<smem>>
    %37 = vector.broadcast %35 : f32 to vector<8x128xf32>
    %38 = arith.minimumf %5, %37 : vector<8x128xf32>
    %39 = vector.broadcast %33 : f32 to vector<8x128xf32>
    %40 = arith.maximumf %1, %39 : vector<8x128xf32>
    %41 = arith.subf %38, %40 : vector<8x128xf32>
    %cst_19 = arith.constant 1.000000e+00 : f32
    %42 = vector.broadcast %cst_19 : f32 to vector<8x128xf32>
    %43 = arith.addf %41, %42 : vector<8x128xf32>
    %cst_20 = arith.constant 0.000000e+00 : f32
    %44 = vector.broadcast %cst_20 : f32 to vector<8x128xf32>
    %45 = arith.maximumf %43, %44 : vector<8x128xf32>
    %46 = vector.broadcast %36 : f32 to vector<8x128xf32>
    %47 = arith.minimumf %7, %46 : vector<8x128xf32>
    %48 = vector.broadcast %34 : f32 to vector<8x128xf32>
    %49 = arith.maximumf %3, %48 : vector<8x128xf32>
    %50 = arith.subf %47, %49 : vector<8x128xf32>
    %cst_21 = arith.constant 1.000000e+00 : f32
    %51 = vector.broadcast %cst_21 : f32 to vector<8x128xf32>
    %52 = arith.addf %50, %51 : vector<8x128xf32>
    %cst_22 = arith.constant 0.000000e+00 : f32
    %53 = vector.broadcast %cst_22 : f32 to vector<8x128xf32>
    %54 = arith.maximumf %52, %53 : vector<8x128xf32>
    %55 = arith.mulf %45, %54 : vector<8x128xf32>
    %56 = arith.subf %35, %33 : f32
    %cst_23 = arith.constant 1.000000e+00 : f32
    %57 = arith.addf %56, %cst_23 : f32
    %58 = arith.subf %36, %34 : f32
    %cst_24 = arith.constant 1.000000e+00 : f32
    %59 = arith.addf %58, %cst_24 : f32
    %60 = arith.mulf %57, %59 : f32
    %61 = vector.broadcast %60 : f32 to vector<8x128xf32>
    %62 = arith.addf %29, %61 : vector<8x128xf32>
    %63 = arith.subf %62, %55 : vector<8x128xf32>
    %64 = arith.divf %55, %63 : vector<8x128xf32>
    %cst_25 = arith.constant -1.000000e+00 : f32
    %65 = vector.broadcast %cst_25 : f32 to vector<8x128xf32>
    %66 = arith.select %22, %64, %65 : vector<8x128xi1>, vector<8x128xf32>
    %67 = arith.cmpf ogt, %66, %30 : vector<8x128xf32>
    %68 = arith.select %67, %66, %30 : vector<8x128xi1>, vector<8x128xf32>
    %cst_26 = arith.constant 0.000000e+00 : f32
    %69 = vector.broadcast %cst_26 : f32 to vector<8x128xf32>
    %70 = arith.select %67, %69, %31 : vector<8x128xi1>, vector<8x128xf32>
    %71 = vector.shape_cast %66 : vector<8x128xf32> to vector<1x8x128xf32>
    %cst_27 = arith.constant dense<0xFF800000> : vector<1xf32>
    %72 = vector.multi_reduction <maximumf>, %71, %cst_27 [1, 2] : vector<1x8x128xf32> to vector<1xf32>
    %73 = vector.shape_cast %72 : vector<1xf32> to vector<1x1x1xf32>
    %74 = vector.extract %73[0, 0, 0] : f32 from vector<1x1x1xf32>
    %75 = vector.broadcast %74 : f32 to vector<1x1xf32>
    %cst_28 = arith.constant 0.000000e+00 : f32
    %76 = vector.broadcast %cst_28 : f32 to vector<1x1xf32>
    %77 = arith.cmpf oeq, %75, %76 : vector<1x1xf32>
    %cst_29 = arith.constant 9.99999974E-6 : f32
    %78 = vector.broadcast %cst_29 : f32 to vector<1x1xf32>
    %79 = arith.select %77, %78, %75 : vector<1x1xi1>, vector<1x1xf32>
    %80 = vector.broadcast %79 : vector<1x1xf32> to vector<8x128xf32>
    %81 = arith.cmpf oeq, %66, %80 : vector<8x128xf32>
    %82 = arith.extui %81 : vector<8x128xi1> to vector<8x128xi32>
    %83 = arith.sitofp %82 : vector<8x128xi32> to vector<8x128xf32>
    %84 = arith.addf %32, %83 : vector<8x128xf32>
    %c7 = arith.constant 7 : index
    %85 = memref.load %arg2[%c7] : memref<14xf32, #tpu.memory_space<smem>>
    %c8 = arith.constant 8 : index
    %86 = memref.load %arg2[%c8] : memref<14xf32, #tpu.memory_space<smem>>
    %c10 = arith.constant 10 : index
    %87 = memref.load %arg2[%c10] : memref<14xf32, #tpu.memory_space<smem>>
    %c11 = arith.constant 11 : index
    %88 = memref.load %arg2[%c11] : memref<14xf32, #tpu.memory_space<smem>>
    %89 = vector.broadcast %87 : f32 to vector<8x128xf32>
    %90 = arith.minimumf %5, %89 : vector<8x128xf32>
    %91 = vector.broadcast %85 : f32 to vector<8x128xf32>
    %92 = arith.maximumf %1, %91 : vector<8x128xf32>
    %93 = arith.subf %90, %92 : vector<8x128xf32>
    %cst_30 = arith.constant 1.000000e+00 : f32
    %94 = vector.broadcast %cst_30 : f32 to vector<8x128xf32>
    %95 = arith.addf %93, %94 : vector<8x128xf32>
    %cst_31 = arith.constant 0.000000e+00 : f32
    %96 = vector.broadcast %cst_31 : f32 to vector<8x128xf32>
    %97 = arith.maximumf %95, %96 : vector<8x128xf32>
    %98 = vector.broadcast %88 : f32 to vector<8x128xf32>
    %99 = arith.minimumf %7, %98 : vector<8x128xf32>
    %100 = vector.broadcast %86 : f32 to vector<8x128xf32>
    %101 = arith.maximumf %3, %100 : vector<8x128xf32>
    %102 = arith.subf %99, %101 : vector<8x128xf32>
    %cst_32 = arith.constant 1.000000e+00 : f32
    %103 = vector.broadcast %cst_32 : f32 to vector<8x128xf32>
    %104 = arith.addf %102, %103 : vector<8x128xf32>
    %cst_33 = arith.constant 0.000000e+00 : f32
    %105 = vector.broadcast %cst_33 : f32 to vector<8x128xf32>
    %106 = arith.maximumf %104, %105 : vector<8x128xf32>
    %107 = arith.mulf %97, %106 : vector<8x128xf32>
    %108 = arith.subf %87, %85 : f32
    %cst_34 = arith.constant 1.000000e+00 : f32
    %109 = arith.addf %108, %cst_34 : f32
    %110 = arith.subf %88, %86 : f32
    %cst_35 = arith.constant 1.000000e+00 : f32
    %111 = arith.addf %110, %cst_35 : f32
    %112 = arith.mulf %109, %111 : f32
    %113 = vector.broadcast %112 : f32 to vector<8x128xf32>
    %114 = arith.addf %29, %113 : vector<8x128xf32>
    %115 = arith.subf %114, %107 : vector<8x128xf32>
    %116 = arith.divf %107, %115 : vector<8x128xf32>
    %cst_36 = arith.constant -1.000000e+00 : f32
    %117 = vector.broadcast %cst_36 : f32 to vector<8x128xf32>
    %118 = arith.select %22, %116, %117 : vector<8x128xi1>, vector<8x128xf32>
    %119 = arith.cmpf ogt, %118, %68 : vector<8x128xf32>
    %120 = arith.select %119, %118, %68 : vector<8x128xi1>, vector<8x128xf32>
    %cst_37 = arith.constant 1.000000e+00 : f32
    %121 = vector.broadcast %cst_37 : f32 to vector<8x128xf32>
    %122 = arith.select %119, %121, %70 : vector<8x128xi1>, vector<8x128xf32>
    %123 = vector.shape_cast %118 : vector<8x128xf32> to vector<1x8x128xf32>
    %cst_38 = arith.constant dense<0xFF800000> : vector<1xf32>
    %124 = vector.multi_reduction <maximumf>, %123, %cst_38 [1, 2] : vector<1x8x128xf32> to vector<1xf32>
    %125 = vector.shape_cast %124 : vector<1xf32> to vector<1x1x1xf32>
    %126 = vector.extract %125[0, 0, 0] : f32 from vector<1x1x1xf32>
    %127 = vector.broadcast %126 : f32 to vector<1x1xf32>
    %cst_39 = arith.constant 0.000000e+00 : f32
    %128 = vector.broadcast %cst_39 : f32 to vector<1x1xf32>
    %129 = arith.cmpf oeq, %127, %128 : vector<1x1xf32>
    %cst_40 = arith.constant 9.99999974E-6 : f32
    %130 = vector.broadcast %cst_40 : f32 to vector<1x1xf32>
    %131 = arith.select %129, %130, %127 : vector<1x1xi1>, vector<1x1xf32>
    %132 = vector.broadcast %131 : vector<1x1xf32> to vector<8x128xf32>
    %133 = arith.cmpf oeq, %118, %132 : vector<8x128xf32>
    %134 = arith.extui %133 : vector<8x128xi1> to vector<8x128xi32>
    %135 = arith.sitofp %134 : vector<8x128xi32> to vector<8x128xf32>
    %136 = arith.addf %84, %135 : vector<8x128xf32>
    %cst_41 = arith.constant -1.000000e+00 : f32
    %137 = vector.broadcast %cst_41 : f32 to vector<8x128xf32>
    %cst_42 = arith.constant 3.000000e-01 : f32
    %138 = vector.broadcast %cst_42 : f32 to vector<8x128xf32>
    %139 = arith.cmpf olt, %120, %138 : vector<8x128xf32>
    %140 = arith.andi %22, %139 : vector<8x128xi1>
    %cst_43 = arith.constant 0.000000e+00 : f32
    %141 = vector.broadcast %cst_43 : f32 to vector<8x128xf32>
    %142 = arith.select %140, %141, %137 : vector<8x128xi1>, vector<8x128xf32>
    %cst_44 = arith.constant 0.000000e+00 : f32
    %143 = vector.broadcast %cst_44 : f32 to vector<8x128xf32>
    %144 = arith.cmpf ogt, %136, %143 : vector<8x128xf32>
    %145 = arith.andi %22, %144 : vector<8x128xi1>
    %cst_45 = arith.constant 1.000000e+00 : f32
    %146 = vector.broadcast %cst_45 : f32 to vector<8x128xf32>
    %147 = arith.select %145, %146, %142 : vector<8x128xi1>, vector<8x128xf32>
    %cst_46 = arith.constant 0.699999988 : f32
    %148 = vector.broadcast %cst_46 : f32 to vector<8x128xf32>
    %149 = arith.cmpf oge, %120, %148 : vector<8x128xf32>
    %150 = arith.andi %22, %149 : vector<8x128xi1>
    %cst_47 = arith.constant 1.000000e+00 : f32
    %151 = vector.broadcast %cst_47 : f32 to vector<8x128xf32>
    %152 = arith.select %150, %151, %147 : vector<8x128xi1>, vector<8x128xf32>
    %cst_48 = arith.constant 3.000000e-01 : f32
    %153 = vector.broadcast %cst_48 : f32 to vector<8x128xf32>
    %154 = arith.cmpf olt, %120, %153 : vector<8x128xf32>
    %155 = arith.andi %22, %154 : vector<8x128xi1>
    %cst_49 = arith.constant 0.000000e+00 : f32
    %156 = vector.broadcast %cst_49 : f32 to vector<8x128xf32>
    %157 = arith.select %155, %156, %137 : vector<8x128xi1>, vector<8x128xf32>
    %cst_50 = arith.constant 0.000000e+00 : f32
    %158 = vector.broadcast %cst_50 : f32 to vector<8x128xf32>
    %159 = arith.cmpf oge, %157, %158 : vector<8x128xf32>
    %160 = arith.extui %159 : vector<8x128xi1> to vector<8x128xi32>
    %161 = arith.sitofp %160 : vector<8x128xi32> to vector<8x128xf32>
    %162 = vector.shape_cast %161 : vector<8x128xf32> to vector<1x8x128xf32>
    %cst_51 = arith.constant dense<0.000000e+00> : vector<1xf32>
    %163 = vector.multi_reduction <add>, %162, %cst_51 [1, 2] : vector<1x8x128xf32> to vector<1xf32>
    %164 = vector.shape_cast %163 : vector<1xf32> to vector<1x1x1xf32>
    %165 = vector.extract %164[0, 0, 0] : f32 from vector<1x1x1xf32>
    %166 = vector.broadcast %165 : f32 to vector<1x1xf32>
    %cst_52 = arith.constant 1.000000e+00 : f32
    %167 = vector.broadcast %cst_52 : f32 to vector<1x1xf32>
    %168 = arith.maximumf %166, %167 : vector<1x1xf32>
    %cst_53 = arith.constant 1.000000e+00 : f32
    %169 = vector.broadcast %cst_53 : f32 to vector<1x1xf32>
    %170 = arith.divf %169, %168 : vector<1x1xf32>
    %cst_54 = arith.constant 1.000000e+00 : f32
    %171 = vector.broadcast %cst_54 : f32 to vector<8x128xf32>
    %172 = arith.cmpf oeq, %152, %171 : vector<8x128xf32>
    %cst_55 = arith.constant 1.000000e+00 : f32
    %cst_56 = arith.constant 0.000000e+00 : f32
    %173 = vector.broadcast %cst_55 : f32 to vector<8x128xf32>
    %174 = vector.broadcast %cst_56 : f32 to vector<8x128xf32>
    %175 = arith.select %172, %173, %174 : vector<8x128xi1>, vector<8x128xf32>
    %cst_57 = arith.constant 0.000000e+00 : f32
    %176 = vector.broadcast %cst_57 : f32 to vector<8x128xf32>
    %177 = arith.cmpf oeq, %157, %176 : vector<8x128xf32>
    %cst_58 = arith.constant 0.000000e+00 : f32
    %178 = vector.shape_cast %170 : vector<1x1xf32> to vector<1x1xf32>
    %179 = vector.broadcast %178 : vector<1x1xf32> to vector<8x128xf32>
    %180 = vector.broadcast %cst_58 : f32 to vector<8x128xf32>
    %181 = arith.select %177, %179, %180 : vector<8x128xi1>, vector<8x128xf32>
    %c0_59 = arith.constant 0 : index
    %c0_60 = arith.constant 0 : index
    %c0_61 = arith.constant 0 : index
    %182 = vector.load %arg4[%c0_59, %c0_60, %c0_61] : memref<3x8x128xf32, #tpu.memory_space<vmem>>, vector<1x8x128xf32>
    %183 = vector.shape_cast %182 : vector<1x8x128xf32> to vector<8x128xf32>
    %184 = vector.shape_cast %152 : vector<8x128xf32> to vector<1x8x128xf32>
    tpu.vector_store %arg4[%c0_59, %c0_60, %c0_61], %184 {strides = array<i32>} : memref<3x8x128xf32, #tpu.memory_space<vmem>>, vector<1x8x128xf32>,
    %c1_62 = arith.constant 1 : index
    %c0_63 = arith.constant 0 : index
    %c0_64 = arith.constant 0 : index
    %185 = vector.load %arg4[%c1_62, %c0_63, %c0_64] : memref<3x8x128xf32, #tpu.memory_space<vmem>>, vector<1x8x128xf32>
    %186 = vector.shape_cast %185 : vector<1x8x128xf32> to vector<8x128xf32>
    %187 = vector.shape_cast %175 : vector<8x128xf32> to vector<1x8x128xf32>
    tpu.vector_store %arg4[%c1_62, %c0_63, %c0_64], %187 {strides = array<i32>} : memref<3x8x128xf32, #tpu.memory_space<vmem>>, vector<1x8x128xf32>,
    %c2_65 = arith.constant 2 : index
    %c0_66 = arith.constant 0 : index
    %c0_67 = arith.constant 0 : index
    %188 = vector.load %arg4[%c2_65, %c0_66, %c0_67] : memref<3x8x128xf32, #tpu.memory_space<vmem>>, vector<1x8x128xf32>
    %189 = vector.shape_cast %188 : vector<1x8x128xf32> to vector<8x128xf32>
    %190 = vector.shape_cast %181 : vector<8x128xf32> to vector<1x8x128xf32>
    tpu.vector_store %arg4[%c2_65, %c0_66, %c0_67], %190 {strides = array<i32>} : memref<3x8x128xf32, #tpu.memory_space<vmem>>, vector<1x8x128xf32>,
    %191 = arith.subf %5, %1 : vector<8x128xf32>
    %cst_68 = arith.constant 1.000000e+00 : f32
    %192 = vector.broadcast %cst_68 : f32 to vector<8x128xf32>
    %193 = arith.addf %191, %192 : vector<8x128xf32>
    %194 = arith.subf %7, %3 : vector<8x128xf32>
    %cst_69 = arith.constant 1.000000e+00 : f32
    %195 = vector.broadcast %cst_69 : f32 to vector<8x128xf32>
    %196 = arith.addf %194, %195 : vector<8x128xf32>
    %cst_70 = arith.constant 5.000000e-01 : f32
    %197 = vector.broadcast %cst_70 : f32 to vector<8x128xf32>
    %198 = arith.mulf %197, %193 : vector<8x128xf32>
    %199 = arith.addf %1, %198 : vector<8x128xf32>
    %cst_71 = arith.constant 5.000000e-01 : f32
    %200 = vector.broadcast %cst_71 : f32 to vector<8x128xf32>
    %201 = arith.mulf %200, %196 : vector<8x128xf32>
    %202 = arith.addf %3, %201 : vector<8x128xf32>
    %cst_72 = arith.constant 1.000000e+00 : f32
    %203 = vector.broadcast %cst_72 : f32 to vector<8x128xf32>
    %204 = arith.divf %203, %193 : vector<8x128xf32>
    %cst_73 = arith.constant 1.000000e+00 : f32
    %205 = vector.broadcast %cst_73 : f32 to vector<8x128xf32>
    %206 = arith.divf %205, %196 : vector<8x128xf32>
    %cst_74 = arith.constant 0.000000e+00 : f32
    %207 = vector.broadcast %cst_74 : f32 to vector<8x128xf32>
    %208 = arith.cmpf oeq, %122, %207 : vector<8x128xf32>
    %209 = arith.extui %208 : vector<8x128xi1> to vector<8x128xi32>
    %210 = arith.sitofp %209 : vector<8x128xi32> to vector<8x128xf32>
    %cst_75 = arith.constant 1.000000e+00 : f32
    %211 = vector.broadcast %cst_75 : f32 to vector<8x128xf32>
    %212 = arith.cmpf oeq, %122, %211 : vector<8x128xf32>
    %213 = arith.extui %212 : vector<8x128xi1> to vector<8x128xi32>
    %214 = arith.sitofp %213 : vector<8x128xi32> to vector<8x128xf32>
    %cst_76 = arith.constant 0.000000e+00 : f32
    %215 = vector.broadcast %cst_76 : f32 to vector<8x128xf32>
    %cst_77 = arith.constant 0.000000e+00 : f32
    %216 = vector.broadcast %cst_77 : f32 to vector<8x128xf32>
    %cst_78 = arith.constant 0.000000e+00 : f32
    %217 = vector.broadcast %cst_78 : f32 to vector<8x128xf32>
    %cst_79 = arith.constant 0.000000e+00 : f32
    %218 = vector.broadcast %cst_79 : f32 to vector<8x128xf32>
    %c0_80 = arith.constant 0 : index
    %219 = memref.load %arg3[%c0_80] : memref<30xf32, #tpu.memory_space<smem>>
    %c1_81 = arith.constant 1 : index
    %220 = memref.load %arg3[%c1_81] : memref<30xf32, #tpu.memory_space<smem>>
    %c2_82 = arith.constant 2 : index
    %221 = memref.load %arg3[%c2_82] : memref<30xf32, #tpu.memory_space<smem>>
    %c3_83 = arith.constant 3 : index
    %222 = memref.load %arg3[%c3_83] : memref<30xf32, #tpu.memory_space<smem>>
    %223 = arith.subf %221, %219 : f32
    %cst_84 = arith.constant 1.000000e+00 : f32
    %224 = arith.addf %223, %cst_84 : f32
    %225 = arith.subf %222, %220 : f32
    %cst_85 = arith.constant 1.000000e+00 : f32
    %226 = arith.addf %225, %cst_85 : f32
    %cst_86 = arith.constant 5.000000e-01 : f32
    %227 = arith.mulf %cst_86, %224 : f32
    %228 = arith.addf %219, %227 : f32
    %cst_87 = arith.constant 5.000000e-01 : f32
    %229 = arith.mulf %cst_87, %226 : f32
    %230 = arith.addf %220, %229 : f32
    %231 = vector.broadcast %228 : f32 to vector<8x128xf32>
    %232 = arith.mulf %231, %210 : vector<8x128xf32>
    %233 = arith.addf %215, %232 : vector<8x128xf32>
    %234 = vector.broadcast %230 : f32 to vector<8x128xf32>
    %235 = arith.mulf %234, %210 : vector<8x128xf32>
    %236 = arith.addf %216, %235 : vector<8x128xf32>
    %237 = vector.broadcast %224 : f32 to vector<8x128xf32>
    %238 = arith.mulf %237, %210 : vector<8x128xf32>
    %239 = arith.addf %217, %238 : vector<8x128xf32>
    %240 = vector.broadcast %226 : f32 to vector<8x128xf32>
    %241 = arith.mulf %240, %210 : vector<8x128xf32>
    %242 = arith.addf %218, %241 : vector<8x128xf32>
    %c5 = arith.constant 5 : index
    %243 = memref.load %arg3[%c5] : memref<30xf32, #tpu.memory_space<smem>>
    %c6 = arith.constant 6 : index
    %244 = memref.load %arg3[%c6] : memref<30xf32, #tpu.memory_space<smem>>
    %c7_88 = arith.constant 7 : index
    %245 = memref.load %arg3[%c7_88] : memref<30xf32, #tpu.memory_space<smem>>
    %c8_89 = arith.constant 8 : index
    %246 = memref.load %arg3[%c8_89] : memref<30xf32, #tpu.memory_space<smem>>
    %247 = arith.subf %245, %243 : f32
    %cst_90 = arith.constant 1.000000e+00 : f32
    %248 = arith.addf %247, %cst_90 : f32
    %249 = arith.subf %246, %244 : f32
    %cst_91 = arith.constant 1.000000e+00 : f32
    %250 = arith.addf %249, %cst_91 : f32
    %cst_92 = arith.constant 5.000000e-01 : f32
    %251 = arith.mulf %cst_92, %248 : f32
    %252 = arith.addf %243, %251 : f32
    %cst_93 = arith.constant 5.000000e-01 : f32
    %253 = arith.mulf %cst_93, %250 : f32
    %254 = arith.addf %244, %253 : f32
    %255 = vector.broadcast %252 : f32 to vector<8x128xf32>
    %256 = arith.mulf %255, %214 : vector<8x128xf32>
    %257 = arith.addf %233, %256 : vector<8x128xf32>
    %258 = vector.broadcast %254 : f32 to vector<8x128xf32>
    %259 = arith.mulf %258, %214 : vector<8x128xf32>
    %260 = arith.addf %236, %259 : vector<8x128xf32>
    %261 = vector.broadcast %248 : f32 to vector<8x128xf32>
    %262 = arith.mulf %261, %214 : vector<8x128xf32>
    %263 = arith.addf %239, %262 : vector<8x128xf32>
    %264 = vector.broadcast %250 : f32 to vector<8x128xf32>
    %265 = arith.mulf %264, %214 : vector<8x128xf32>
    %266 = arith.addf %242, %265 : vector<8x128xf32>
    %267 = arith.subf %257, %199 : vector<8x128xf32>
    %268 = arith.mulf %267, %204 : vector<8x128xf32>
    %269 = arith.subf %260, %202 : vector<8x128xf32>
    %270 = arith.mulf %269, %206 : vector<8x128xf32>
    %271 = arith.mulf %263, %204 : vector<8x128xf32>
    %272 = math.log %271 : vector<8x128xf32>
    %273 = arith.mulf %266, %206 : vector<8x128xf32>
    %274 = math.log %273 : vector<8x128xf32>
    %cst_94 = arith.constant 0.000000e+00 : f32
    %275 = vector.broadcast %cst_94 : f32 to vector<8x128xf32>
    %276 = arith.select %22, %268, %275 : vector<8x128xi1>, vector<8x128xf32>
    %c0_95 = arith.constant 0 : index
    %c0_96 = arith.constant 0 : index
    %c0_97 = arith.constant 0 : index
    %c0_98 = arith.constant 0 : index
    %277 = vector.load %arg5[%c0_95, %c0_96, %c0_97, %c0_98] : memref<4x3x8x128xf32, #tpu.memory_space<vmem>>, vector<1x1x8x128xf32>
    %278 = vector.shape_cast %277 : vector<1x1x8x128xf32> to vector<8x128xf32>
    %279 = vector.shape_cast %276 : vector<8x128xf32> to vector<1x1x8x128xf32>
    tpu.vector_store %arg5[%c0_95, %c0_96, %c0_97, %c0_98], %279 {strides = array<i32>} : memref<4x3x8x128xf32, #tpu.memory_space<vmem>>, vector<1x1x8x128xf32>,
    %cst_99 = arith.constant 0.000000e+00 : f32
    %280 = vector.broadcast %cst_99 : f32 to vector<8x128xf32>
    %281 = arith.select %22, %270, %280 : vector<8x128xi1>, vector<8x128xf32>
    %c1_100 = arith.constant 1 : index
    %c0_101 = arith.constant 0 : index
    %c0_102 = arith.constant 0 : index
    %c0_103 = arith.constant 0 : index
    %282 = vector.load %arg5[%c1_100, %c0_101, %c0_102, %c0_103] : memref<4x3x8x128xf32, #tpu.memory_space<vmem>>, vector<1x1x8x128xf32>
    %283 = vector.shape_cast %282 : vector<1x1x8x128xf32> to vector<8x128xf32>
    %284 = vector.shape_cast %281 : vector<8x128xf32> to vector<1x1x8x128xf32>
    tpu.vector_store %arg5[%c1_100, %c0_101, %c0_102, %c0_103], %284 {strides = array<i32>} : memref<4x3x8x128xf32, #tpu.memory_space<vmem>>, vector<1x1x8x128xf32>,
    %cst_104 = arith.constant 0.000000e+00 : f32
    %285 = vector.broadcast %cst_104 : f32 to vector<8x128xf32>
    %286 = arith.select %22, %272, %285 : vector<8x128xi1>, vector<8x128xf32>
    %c2_105 = arith.constant 2 : index
    %c0_106 = arith.constant 0 : index
    %c0_107 = arith.constant 0 : index
    %c0_108 = arith.constant 0 : index
    %287 = vector.load %arg5[%c2_105, %c0_106, %c0_107, %c0_108] : memref<4x3x8x128xf32, #tpu.memory_space<vmem>>, vector<1x1x8x128xf32>
    %288 = vector.shape_cast %287 : vector<1x1x8x128xf32> to vector<8x128xf32>
    %289 = vector.shape_cast %286 : vector<8x128xf32> to vector<1x1x8x128xf32>
    tpu.vector_store %arg5[%c2_105, %c0_106, %c0_107, %c0_108], %289 {strides = array<i32>} : memref<4x3x8x128xf32, #tpu.memory_space<vmem>>, vector<1x1x8x128xf32>,
    %cst_109 = arith.constant 0.000000e+00 : f32
    %290 = vector.broadcast %cst_109 : f32 to vector<8x128xf32>
    %291 = arith.select %22, %274, %290 : vector<8x128xi1>, vector<8x128xf32>
    %c3_110 = arith.constant 3 : index
    %c0_111 = arith.constant 0 : index
    %c0_112 = arith.constant 0 : index
    %c0_113 = arith.constant 0 : index
    %292 = vector.load %arg5[%c3_110, %c0_111, %c0_112, %c0_113] : memref<4x3x8x128xf32, #tpu.memory_space<vmem>>, vector<1x1x8x128xf32>
    %293 = vector.shape_cast %292 : vector<1x1x8x128xf32> to vector<8x128xf32>
    %294 = vector.shape_cast %291 : vector<8x128xf32> to vector<1x1x8x128xf32>
    tpu.vector_store %arg5[%c3_110, %c0_111, %c0_112, %c0_113], %294 {strides = array<i32>} : memref<4x3x8x128xf32, #tpu.memory_space<vmem>>, vector<1x1x8x128xf32>,
    %cst_114 = arith.constant 0.000000e+00 : f32
    %295 = vector.broadcast %cst_114 : f32 to vector<8x128xf32>
    %cst_115 = arith.constant 0.000000e+00 : f32
    %296 = vector.broadcast %cst_115 : f32 to vector<8x128xf32>
    %cst_116 = arith.constant 0.000000e+00 : f32
    %297 = vector.broadcast %cst_116 : f32 to vector<8x128xf32>
    %cst_117 = arith.constant 0.000000e+00 : f32
    %298 = vector.broadcast %cst_117 : f32 to vector<8x128xf32>
    %c10_118 = arith.constant 10 : index
    %299 = memref.load %arg3[%c10_118] : memref<30xf32, #tpu.memory_space<smem>>
    %c11_119 = arith.constant 11 : index
    %300 = memref.load %arg3[%c11_119] : memref<30xf32, #tpu.memory_space<smem>>
    %c12 = arith.constant 12 : index
    %301 = memref.load %arg3[%c12] : memref<30xf32, #tpu.memory_space<smem>>
    %c13 = arith.constant 13 : index
    %302 = memref.load %arg3[%c13] : memref<30xf32, #tpu.memory_space<smem>>
    %303 = arith.subf %301, %299 : f32
    %cst_120 = arith.constant 1.000000e+00 : f32
    %304 = arith.addf %303, %cst_120 : f32
    %305 = arith.subf %302, %300 : f32
    %cst_121 = arith.constant 1.000000e+00 : f32
    %306 = arith.addf %305, %cst_121 : f32
    %cst_122 = arith.constant 5.000000e-01 : f32
    %307 = arith.mulf %cst_122, %304 : f32
    %308 = arith.addf %299, %307 : f32
    %cst_123 = arith.constant 5.000000e-01 : f32
    %309 = arith.mulf %cst_123, %306 : f32
    %310 = arith.addf %300, %309 : f32
    %311 = vector.broadcast %308 : f32 to vector<8x128xf32>
    %312 = arith.mulf %311, %210 : vector<8x128xf32>
    %313 = arith.addf %295, %312 : vector<8x128xf32>
    %314 = vector.broadcast %310 : f32 to vector<8x128xf32>
    %315 = arith.mulf %314, %210 : vector<8x128xf32>
    %316 = arith.addf %296, %315 : vector<8x128xf32>
    %317 = vector.broadcast %304 : f32 to vector<8x128xf32>
    %318 = arith.mulf %317, %210 : vector<8x128xf32>
    %319 = arith.addf %297, %318 : vector<8x128xf32>
    %320 = vector.broadcast %306 : f32 to vector<8x128xf32>
    %321 = arith.mulf %320, %210 : vector<8x128xf32>
    %322 = arith.addf %298, %321 : vector<8x128xf32>
    %c15 = arith.constant 15 : index
    %323 = memref.load %arg3[%c15] : memref<30xf32, #tpu.memory_space<smem>>
    %c16 = arith.constant 16 : index
    %324 = memref.load %arg3[%c16] : memref<30xf32, #tpu.memory_space<smem>>
    %c17 = arith.constant 17 : index
    %325 = memref.load %arg3[%c17] : memref<30xf32, #tpu.memory_space<smem>>
    %c18 = arith.constant 18 : index
    %326 = memref.load %arg3[%c18] : memref<30xf32, #tpu.memory_space<smem>>
    %327 = arith.subf %325, %323 : f32
    %cst_124 = arith.constant 1.000000e+00 : f32
    %328 = arith.addf %327, %cst_124 : f32
    %329 = arith.subf %326, %324 : f32
    %cst_125 = arith.constant 1.000000e+00 : f32
    %330 = arith.addf %329, %cst_125 : f32
    %cst_126 = arith.constant 5.000000e-01 : f32
    %331 = arith.mulf %cst_126, %328 : f32
    %332 = arith.addf %323, %331 : f32
    %cst_127 = arith.constant 5.000000e-01 : f32
    %333 = arith.mulf %cst_127, %330 : f32
    %334 = arith.addf %324, %333 : f32
    %335 = vector.broadcast %332 : f32 to vector<8x128xf32>
    %336 = arith.mulf %335, %214 : vector<8x128xf32>
    %337 = arith.addf %313, %336 : vector<8x128xf32>
    %338 = vector.broadcast %334 : f32 to vector<8x128xf32>
    %339 = arith.mulf %338, %214 : vector<8x128xf32>
    %340 = arith.addf %316, %339 : vector<8x128xf32>
    %341 = vector.broadcast %328 : f32 to vector<8x128xf32>
    %342 = arith.mulf %341, %214 : vector<8x128xf32>
    %343 = arith.addf %319, %342 : vector<8x128xf32>
    %344 = vector.broadcast %330 : f32 to vector<8x128xf32>
    %345 = arith.mulf %344, %214 : vector<8x128xf32>
    %346 = arith.addf %322, %345 : vector<8x128xf32>
    %347 = arith.subf %337, %199 : vector<8x128xf32>
    %348 = arith.mulf %347, %204 : vector<8x128xf32>
    %349 = arith.subf %340, %202 : vector<8x128xf32>
    %350 = arith.mulf %349, %206 : vector<8x128xf32>
    %351 = arith.mulf %343, %204 : vector<8x128xf32>
    %352 = math.log %351 : vector<8x128xf32>
    %353 = arith.mulf %346, %206 : vector<8x128xf32>
    %354 = math.log %353 : vector<8x128xf32>
    %cst_128 = arith.constant 0.000000e+00 : f32
    %355 = vector.broadcast %cst_128 : f32 to vector<8x128xf32>
    %356 = arith.select %22, %348, %355 : vector<8x128xi1>, vector<8x128xf32>
    %c0_129 = arith.constant 0 : index
    %c1_130 = arith.constant 1 : index
    %c0_131 = arith.constant 0 : index
    %c0_132 = arith.constant 0 : index
    %357 = vector.load %arg5[%c0_129, %c1_130, %c0_131, %c0_132] : memref<4x3x8x128xf32, #tpu.memory_space<vmem>>, vector<1x1x8x128xf32>
    %358 = vector.shape_cast %357 : vector<1x1x8x128xf32> to vector<8x128xf32>
    %359 = vector.shape_cast %356 : vector<8x128xf32> to vector<1x1x8x128xf32>
    tpu.vector_store %arg5[%c0_129, %c1_130, %c0_131, %c0_132], %359 {strides = array<i32>} : memref<4x3x8x128xf32, #tpu.memory_space<vmem>>, vector<1x1x8x128xf32>,
    %cst_133 = arith.constant 0.000000e+00 : f32
    %360 = vector.broadcast %cst_133 : f32 to vector<8x128xf32>
    %361 = arith.select %22, %350, %360 : vector<8x128xi1>, vector<8x128xf32>
    %c1_134 = arith.constant 1 : index
    %c1_135 = arith.constant 1 : index
    %c0_136 = arith.constant 0 : index
    %c0_137 = arith.constant 0 : index
    %362 = vector.load %arg5[%c1_134, %c1_135, %c0_136, %c0_137] : memref<4x3x8x128xf32, #tpu.memory_space<vmem>>, vector<1x1x8x128xf32>
    %363 = vector.shape_cast %362 : vector<1x1x8x128xf32> to vector<8x128xf32>
    %364 = vector.shape_cast %361 : vector<8x128xf32> to vector<1x1x8x128xf32>
    tpu.vector_store %arg5[%c1_134, %c1_135, %c0_136, %c0_137], %364 {strides = array<i32>} : memref<4x3x8x128xf32, #tpu.memory_space<vmem>>, vector<1x1x8x128xf32>,
    %cst_138 = arith.constant 0.000000e+00 : f32
    %365 = vector.broadcast %cst_138 : f32 to vector<8x128xf32>
    %366 = arith.select %22, %352, %365 : vector<8x128xi1>, vector<8x128xf32>
    %c2_139 = arith.constant 2 : index
    %c1_140 = arith.constant 1 : index
    %c0_141 = arith.constant 0 : index
    %c0_142 = arith.constant 0 : index
    %367 = vector.load %arg5[%c2_139, %c1_140, %c0_141, %c0_142] : memref<4x3x8x128xf32, #tpu.memory_space<vmem>>, vector<1x1x8x128xf32>
    %368 = vector.shape_cast %367 : vector<1x1x8x128xf32> to vector<8x128xf32>
    %369 = vector.shape_cast %366 : vector<8x128xf32> to vector<1x1x8x128xf32>
    tpu.vector_store %arg5[%c2_139, %c1_140, %c0_141, %c0_142], %369 {strides = array<i32>} : memref<4x3x8x128xf32, #tpu.memory_space<vmem>>, vector<1x1x8x128xf32>,
    %cst_143 = arith.constant 0.000000e+00 : f32
    %370 = vector.broadcast %cst_143 : f32 to vector<8x128xf32>
    %371 = arith.select %22, %354, %370 : vector<8x128xi1>, vector<8x128xf32>
    %c3_144 = arith.constant 3 : index
    %c1_145 = arith.constant 1 : index
    %c0_146 = arith.constant 0 : index
    %c0_147 = arith.constant 0 : index
    %372 = vector.load %arg5[%c3_144, %c1_145, %c0_146, %c0_147] : memref<4x3x8x128xf32, #tpu.memory_space<vmem>>, vector<1x1x8x128xf32>
    %373 = vector.shape_cast %372 : vector<1x1x8x128xf32> to vector<8x128xf32>
    %374 = vector.shape_cast %371 : vector<8x128xf32> to vector<1x1x8x128xf32>
    tpu.vector_store %arg5[%c3_144, %c1_145, %c0_146, %c0_147], %374 {strides = array<i32>} : memref<4x3x8x128xf32, #tpu.memory_space<vmem>>, vector<1x1x8x128xf32>,
    %cst_148 = arith.constant 0.000000e+00 : f32
    %375 = vector.broadcast %cst_148 : f32 to vector<8x128xf32>
    %cst_149 = arith.constant 0.000000e+00 : f32
    %376 = vector.broadcast %cst_149 : f32 to vector<8x128xf32>
    %cst_150 = arith.constant 0.000000e+00 : f32
    %377 = vector.broadcast %cst_150 : f32 to vector<8x128xf32>
    %cst_151 = arith.constant 0.000000e+00 : f32
    %378 = vector.broadcast %cst_151 : f32 to vector<8x128xf32>
    %c20 = arith.constant 20 : index
    %379 = memref.load %arg3[%c20] : memref<30xf32, #tpu.memory_space<smem>>
    %c21 = arith.constant 21 : index
    %380 = memref.load %arg3[%c21] : memref<30xf32, #tpu.memory_space<smem>>
    %c22 = arith.constant 22 : index
    %381 = memref.load %arg3[%c22] : memref<30xf32, #tpu.memory_space<smem>>
    %c23 = arith.constant 23 : index
    %382 = memref.load %arg3[%c23] : memref<30xf32, #tpu.memory_space<smem>>
    %383 = arith.subf %381, %379 : f32
    %cst_152 = arith.constant 1.000000e+00 : f32
    %384 = arith.addf %383, %cst_152 : f32
    %385 = arith.subf %382, %380 : f32
    %cst_153 = arith.constant 1.000000e+00 : f32
    %386 = arith.addf %385, %cst_153 : f32
    %cst_154 = arith.constant 5.000000e-01 : f32
    %387 = arith.mulf %cst_154, %384 : f32
    %388 = arith.addf %379, %387 : f32
    %cst_155 = arith.constant 5.000000e-01 : f32
    %389 = arith.mulf %cst_155, %386 : f32
    %390 = arith.addf %380, %389 : f32
    %391 = vector.broadcast %388 : f32 to vector<8x128xf32>
    %392 = arith.mulf %391, %210 : vector<8x128xf32>
    %393 = arith.addf %375, %392 : vector<8x128xf32>
    %394 = vector.broadcast %390 : f32 to vector<8x128xf32>
    %395 = arith.mulf %394, %210 : vector<8x128xf32>
    %396 = arith.addf %376, %395 : vector<8x128xf32>
    %397 = vector.broadcast %384 : f32 to vector<8x128xf32>
    %398 = arith.mulf %397, %210 : vector<8x128xf32>
    %399 = arith.addf %377, %398 : vector<8x128xf32>
    %400 = vector.broadcast %386 : f32 to vector<8x128xf32>
    %401 = arith.mulf %400, %210 : vector<8x128xf32>
    %402 = arith.addf %378, %401 : vector<8x128xf32>
    %c25 = arith.constant 25 : index
    %403 = memref.load %arg3[%c25] : memref<30xf32, #tpu.memory_space<smem>>
    %c26 = arith.constant 26 : index
    %404 = memref.load %arg3[%c26] : memref<30xf32, #tpu.memory_space<smem>>
    %c27 = arith.constant 27 : index
    %405 = memref.load %arg3[%c27] : memref<30xf32, #tpu.memory_space<smem>>
    %c28 = arith.constant 28 : index
    %406 = memref.load %arg3[%c28] : memref<30xf32, #tpu.memory_space<smem>>
    %407 = arith.subf %405, %403 : f32
    %cst_156 = arith.constant 1.000000e+00 : f32
    %408 = arith.addf %407, %cst_156 : f32
    %409 = arith.subf %406, %404 : f32
    %cst_157 = arith.constant 1.000000e+00 : f32
    %410 = arith.addf %409, %cst_157 : f32
    %cst_158 = arith.constant 5.000000e-01 : f32
    %411 = arith.mulf %cst_158, %408 : f32
    %412 = arith.addf %403, %411 : f32
    %cst_159 = arith.constant 5.000000e-01 : f32
    %413 = arith.mulf %cst_159, %410 : f32
    %414 = arith.addf %404, %413 : f32
    %415 = vector.broadcast %412 : f32 to vector<8x128xf32>
    %416 = arith.mulf %415, %214 : vector<8x128xf32>
    %417 = arith.addf %393, %416 : vector<8x128xf32>
    %418 = vector.broadcast %414 : f32 to vector<8x128xf32>
    %419 = arith.mulf %418, %214 : vector<8x128xf32>
    %420 = arith.addf %396, %419 : vector<8x128xf32>
    %421 = vector.broadcast %408 : f32 to vector<8x128xf32>
    %422 = arith.mulf %421, %214 : vector<8x128xf32>
    %423 = arith.addf %399, %422 : vector<8x128xf32>
    %424 = vector.broadcast %410 : f32 to vector<8x128xf32>
    %425 = arith.mulf %424, %214 : vector<8x128xf32>
    %426 = arith.addf %402, %425 : vector<8x128xf32>
    %427 = arith.subf %417, %199 : vector<8x128xf32>
    %428 = arith.mulf %427, %204 : vector<8x128xf32>
    %429 = arith.subf %420, %202 : vector<8x128xf32>
    %430 = arith.mulf %429, %206 : vector<8x128xf32>
    %431 = arith.mulf %423, %204 : vector<8x128xf32>
    %432 = math.log %431 : vector<8x128xf32>
    %433 = arith.mulf %426, %206 : vector<8x128xf32>
    %434 = math.log %433 : vector<8x128xf32>
    %cst_160 = arith.constant 0.000000e+00 : f32
    %435 = vector.broadcast %cst_160 : f32 to vector<8x128xf32>
    %436 = arith.select %22, %428, %435 : vector<8x128xi1>, vector<8x128xf32>
    %c0_161 = arith.constant 0 : index
    %c2_162 = arith.constant 2 : index
    %c0_163 = arith.constant 0 : index
    %c0_164 = arith.constant 0 : index
    %437 = vector.load %arg5[%c0_161, %c2_162, %c0_163, %c0_164] : memref<4x3x8x128xf32, #tpu.memory_space<vmem>>, vector<1x1x8x128xf32>
    %438 = vector.shape_cast %437 : vector<1x1x8x128xf32> to vector<8x128xf32>
    %439 = vector.shape_cast %436 : vector<8x128xf32> to vector<1x1x8x128xf32>
    tpu.vector_store %arg5[%c0_161, %c2_162, %c0_163, %c0_164], %439 {strides = array<i32>} : memref<4x3x8x128xf32, #tpu.memory_space<vmem>>, vector<1x1x8x128xf32>,
    %cst_165 = arith.constant 0.000000e+00 : f32
    %440 = vector.broadcast %cst_165 : f32 to vector<8x128xf32>
    %441 = arith.select %22, %430, %440 : vector<8x128xi1>, vector<8x128xf32>
    %c1_166 = arith.constant 1 : index
    %c2_167 = arith.constant 2 : index
    %c0_168 = arith.constant 0 : index
    %c0_169 = arith.constant 0 : index
    %442 = vector.load %arg5[%c1_166, %c2_167, %c0_168, %c0_169] : memref<4x3x8x128xf32, #tpu.memory_space<vmem>>, vector<1x1x8x128xf32>
    %443 = vector.shape_cast %442 : vector<1x1x8x128xf32> to vector<8x128xf32>
    %444 = vector.shape_cast %441 : vector<8x128xf32> to vector<1x1x8x128xf32>
    tpu.vector_store %arg5[%c1_166, %c2_167, %c0_168, %c0_169], %444 {strides = array<i32>} : memref<4x3x8x128xf32, #tpu.memory_space<vmem>>, vector<1x1x8x128xf32>,
    %cst_170 = arith.constant 0.000000e+00 : f32
    %445 = vector.broadcast %cst_170 : f32 to vector<8x128xf32>
    %446 = arith.select %22, %432, %445 : vector<8x128xi1>, vector<8x128xf32>
    %c2_171 = arith.constant 2 : index
    %c2_172 = arith.constant 2 : index
    %c0_173 = arith.constant 0 : index
    %c0_174 = arith.constant 0 : index
    %447 = vector.load %arg5[%c2_171, %c2_172, %c0_173, %c0_174] : memref<4x3x8x128xf32, #tpu.memory_space<vmem>>, vector<1x1x8x128xf32>
    %448 = vector.shape_cast %447 : vector<1x1x8x128xf32> to vector<8x128xf32>
    %449 = vector.shape_cast %446 : vector<8x128xf32> to vector<1x1x8x128xf32>
    tpu.vector_store %arg5[%c2_171, %c2_172, %c0_173, %c0_174], %449 {strides = array<i32>} : memref<4x3x8x128xf32, #tpu.memory_space<vmem>>, vector<1x1x8x128xf32>,
    %cst_175 = arith.constant 0.000000e+00 : f32
    %450 = vector.broadcast %cst_175 : f32 to vector<8x128xf32>
    %451 = arith.select %22, %434, %450 : vector<8x128xi1>, vector<8x128xf32>
    %c3_176 = arith.constant 3 : index
    %c2_177 = arith.constant 2 : index
    %c0_178 = arith.constant 0 : index
    %c0_179 = arith.constant 0 : index
    %452 = vector.load %arg5[%c3_176, %c2_177, %c0_178, %c0_179] : memref<4x3x8x128xf32, #tpu.memory_space<vmem>>, vector<1x1x8x128xf32>
    %453 = vector.shape_cast %452 : vector<1x1x8x128xf32> to vector<8x128xf32>
    %454 = vector.shape_cast %451 : vector<8x128xf32> to vector<1x1x8x128xf32>
    tpu.vector_store %arg5[%c3_176, %c2_177, %c0_178, %c0_179], %454 {strides = array<i32>} : memref<4x3x8x128xf32, #tpu.memory_space<vmem>>, vector<1x1x8x128xf32>,
    return
  }
}

</mosaic_0001>

<bundles_post_ra>
// kernel: squeeze.4
= control target key start
LH: loop header
LB: loop body
LE: loop exit
PB: predicated region body
PF: predicated region fallthrough
CT: control target
= control target key end

     0   :  { %vm7_vm0 = vcmask 56320   ;;  %vm13_vm1 = vcmask 113720   ;;  %s39_s0 = inlined_call_operand.vmem [shape: f32[1,2,7], index: 0, kind: input, shape index: {}]   ;;  %s40_s1 = inlined_call_operand.vmem [shape: f32[14], index: 1, kind: output, shape index: {}]  }
   0x1   :  { %v4_v0 = vld [vmem:[%s39_s0] sm:$0x3]  ;;  %s22_s0 = smov 7  }
   0x2   :  { %5 = vst [vmem:[#allocation1] sm:$0x3] %v4_v0 }
   0x9   :  { %v10_v1 = vld [vmem:[#allocation1 + $0x1] sm:$0x1]   ;;  %v6_v2 = vld [vmem:[#allocation1] sm:$0x1]  }
   0xa   :  { %11 = vrot.lane.b32.xlu0 %v10_v1, %s22_s0  ;;  %8 = vst.msk [vmem:[#allocation0] sm:$0x1] %vm7_vm0, %v6_v2  }
  0x7c   :  { %v12_v3 = vpop.permute.xlu0 %11  }
  0x7d   :  { %14 = vst.msk [vmem:[#allocation0] sm:$0x1] %vm13_vm1, %v12_v3  }
  0x84   :  { %v18_v4 = vld [vmem:[#allocation0] sm:$0x1] }
  0x85   :  { %20 = vst [vmem:[%s40_s1] sm:$0x1] %v18_v4 }

// kernel: _forward_impl.1
= control target key start
LH: loop header
LB: loop body
LE: loop exit
PB: predicated region body
PF: predicated region fallthrough
CT: control target
= control target key end

     0   :  { %11 = vsyncpa [#allocation4], 0  ;;  %s1074_s0 = inlined_call_operand.vmem [shape: f32[3], index: 0, kind: input, shape index: {}]   ;;  %s1075_s1 = inlined_call_operand.hbm [shape: f32[4,8,128], index: 1, kind: input, shape index: {}]   ;;  %s1076_s2 = inlined_call_operand.vmem [shape: f32[14], index: 2, kind: input, shape index: {}]   ;;  %s1077_s3 = inlined_call_operand.vmem [shape: f32[30], index: 3, kind: input, shape index: {}]   ;;  %s1078_s4 = inlined_call_operand.vmem [shape: f32[3,8,128], index: 4, kind: output, shape index: {0}]   ;;  %s1079_s5 = inlined_call_operand.vmem [shape: f32[4,3,8,128], index: 5, kind: output, shape index: {1}]  }
   0x1   :  { %12 = vsyncpa [#allocation3], 0 }
   0x2   :  { %13 = vsyncpa [#allocation7], 0  ;;  %s42_s20 = sshll.u32 %s1076_s2, 4  ;;  %s20_s23 = sshll.u32 %s1074_s0, 4  ;;  %s43_s20 = int_to_ptr.vmem [resolvable:$true] %s42_s20  ;;  %s21_s23 = int_to_ptr.vmem [resolvable:$true] %s20_s23 }
   0x3   :  { %s544_s24 = scalar_lea.vmem %s43_s20, 16  ;;  %p549_p1 = scmp.lt.s32.totalorder %s43_s20, %s43_s20 }
   0x4   :  { %p545_p0 = scmp.ne.s32.totalorder %s43_s20, %s544_s24  ;;  %p550_p2 = scmp.lt.s32.totalorder %s544_s24, %s544_s24 }
   0x6   :  { %p551_p3 = por %p550_p2, %p549_p1 }
   0x8   :  { %p552_p4 = pnand %p551_p3, %p545_p0 }
   0xa   :  { %555 = shalt.err (!%p552_p4)
}
   0xb   :  { %s608_s25 = smov [#allocation6]   ;;  %s556_s26 = scalar_lea.vmem %s21_s23, 16 }
   0xc   :  { %45 = dma.vmem_to_smem %s43_s20, 16, %s608_s25, [#allocation7]  }
   0xd   :  { %p557_p5 = scmp.ne.s32.totalorder %s21_s23, %s556_s26  ;;  %p561_p6 = scmp.lt.s32.totalorder %s21_s23, %s21_s23 }
   0xe   :  { %p562_p7 = scmp.lt.s32.totalorder %s556_s26, %s556_s26 }
  0x10   :  { %p563_p8 = por %p562_p7, %p561_p6 }
  0x12   :  { %p564_p9 = pnand %p563_p8, %p557_p5 }
  0x14   :  { %567 = shalt.err (!%p564_p9)
}
  0x15   :  { %s609_s2 = smov [#allocation2]   ;;  %s610_s0 = smov [#allocation5]  }
  0x16   :  { %23 = dma.vmem_to_smem %s21_s23, 16, %s609_s2, [#allocation4]  }
  0x17   :  { %s29_s27 = sshll.u32 %s610_s0, 4  ;;  %s52_s30 = sshll.u32 %s1077_s3, 4  ;;  %s30_s27 = int_to_ptr.vmem [resolvable:$true] %s29_s27  ;;  %s53_s30 = int_to_ptr.vmem [resolvable:$true] %s52_s30 }
  0x18   :  { %s568_s8 = scalar_lea.hbm %s1075_s1, 512 }
  0x19   :  { %p569_p10 = scmp.ne.s32.totalorder %s1075_s1, %s568_s8  ;;  %p572_p11 = scmp.lt.u32.totalorder %s568_s8, %s1075_s1 }
  0x1b   :  { %p574_p12 = pnand %p572_p11, %p569_p10 }
  0x1d   :  { %577 = shalt.err (!%p574_p12)
}
  0x1e   :  { %s578_s13 = scalar_lea.vmem %s30_s27, 512  ;;  %p583_p0 = scmp.lt.s32.totalorder %s30_s27, %s30_s27 }
  0x1f   :  { %p579_p13 = scmp.ne.s32.totalorder %s30_s27, %s578_s13  ;;  %p584_p1 = scmp.lt.s32.totalorder %s578_s13, %s578_s13 }
  0x21   :  { %p585_p2 = por %p584_p1, %p583_p0 }
  0x23   :  { %p586_p3 = pnand %p585_p2, %p579_p13 }
  0x25   :  { %589 = shalt.err (!%p586_p3)
}
  0x26   :  { %s611_s3 = smov 128   ;;  %s612_s14 = smov 8  }
  0x27   :  { %35 = dma.hbm_to_vmem [thread:$0]  %s1075_s1, 512, %s30_s27, [#allocation3], %s611_s3, %s611_s3, %s612_s14  }
  0x28   :  { %s590_s17 = scalar_lea.vmem %s53_s30, 16  ;;  %p595_p5 = scmp.lt.s32.totalorder %s53_s30, %s53_s30 }
  0x29   :  { %p591_p4 = scmp.ne.s32.totalorder %s53_s30, %s590_s17  ;;  %p596_p6 = scmp.lt.s32.totalorder %s590_s17, %s590_s17 }
  0x2b   :  { %p597_p7 = por %p596_p6, %p595_p5 }
  0x2d   :  { %p598_p8 = pnand %p597_p7, %p591_p4 }
  0x2f   :  { %601 = shalt.err (!%p598_p8)
}
  0x30   :  { %s613_s18 = smov [#allocation8]  }
  0x31   :  { %55 = dma.vmem_to_smem %s53_s30, 16, %s613_s18, [#allocation7]  }
  0x32   :  { %602 = dma.done.wait [#allocation4], 16  }
  0x33   :  { %603 = vsyncadd [#allocation4], 4294967280 }
  0x34   :  { %604 = dma.done.wait [#allocation3], 512  }
  0x35   :  { %605 = vsyncadd [#allocation3], 4294966784 }
  0x36   :  { %606 = dma.done.wait [#allocation7], 32  }
  0x37   :  { %607 = vsyncadd [#allocation7], 4294967264 }
  0x38   :  { %68 = sfence }
  0x39   :  { %s667_s19 = sld [smem:[#allocation2]]  ;;  %s671_s20 = sld [smem:[#allocation6 + $0x1]]  ;;  %v673_v0 = vld [vmem:[#allocation5] sm:$0xff]  ;;  %v675_v1 = vld [vmem:[#allocation5 + $0x10] sm:$0xff]  ;;  %v681_v2 = vld [vmem:[#allocation5 + $0x8] sm:$0xff] }
  0x3a   :  { %s669_s1 = sld [smem:[#allocation6]]  ;;  %s677_s21 = sld [smem:[#allocation6 + $0x3]]  ;;  %v683_v3 = vld [vmem:[#allocation5 + $0x18] sm:$0xff]  ;;  %v89_v4 = vsub.f32 %v675_v1, %v673_v0  ;;  %vm80_vm0 = vcmp.ge.f32.partialorder %v673_v0, 0.0  ;;  %vm81_vm1 = vcmp.ge.f32.partialorder %v681_v2, 0.0 }
  0x3b   :  { %s679_s22 = sld [smem:[#allocation6 + $0x4]]  ;;  %s687_s23 = sld [smem:[#allocation6 + $0x7]]  ;;  %v91_v5 = vsub.f32 %v683_v3, %v681_v2  ;;  %vm82_vm2 = vmand %vm80_vm0, %vm81_vm1 }
  0x3c   :  { %s689_s24 = sld [smem:[#allocation6 + $0x8]]  ;;  %s693_s25 = sld [smem:[#allocation6 + $0xa]]  ;;  %v702_v6 = vadd.f32 1.0, %v89_v4 }
  0x3d   :  { %s695_s26 = sld [smem:[#allocation6 + $0xb]]  ;;  %s697_s2 = sld [smem:[#allocation2 + $0x1]]  ;;  %v710_v9 = vadd.f32 1.0, %v91_v5 }
  0x3e   :  { %s700_s27 = sld [smem:[#allocation8]]  ;;  %s706_s28 = sld [smem:[#allocation8 + $0x1]]  ;;  %v225_v49 = vmul.f32 0.5, %v702_v6 }
  0x3f   :  { %s77_s0 = sfloor.f32 %s667_s19  ;;  %v107_v8 = vstv %s671_s20  ;;  %s708_s29 = sld [smem:[#allocation8 + $0x2]]  ;;  %v93_v24 = vmul.f32 %v710_v9, %v702_v6  ;;  %v227_v51 = vmul.f32 0.5, %v710_v9 }
  0x40   :  { %v100_v7 = vstv %s669_s1  ;;  %v98_v10 = vstv %s677_s21  ;;  %s113_s30 = ssub.f32 %s677_s21, %s669_s1  ;;  %s717_s6 = sld [smem:[#allocation8 + $0x3]]  ;;  %v108_v15 = vmax.f32 %v681_v2, %v107_v8  ;;  %v86_v46 = vstv %s77_s0 }
  0x41   :  { %v101_v11 = vmax.f32 %v673_v0, %v100_v7  ;;  %v105_v12 = vstv %s679_s22  ;;  %v99_v13 = vmin.f32 %v675_v1, %v98_v10  ;;  %s115_s7 = ssub.f32 %s679_s22, %s671_s20  ;;  %s724_s8 = sld [smem:[#allocation8 + $0x5]]  ;;  %v148_v17 = vstv %s687_s23 }
  0x42   :  { %v106_v14 = vmin.f32 %v683_v3, %v105_v12  ;;  %s114_s9 = sadd.f32 1.0, %s113_s30  ;;  %v146_v16 = vstv %s693_s25  ;;  %v155_v19 = vstv %s689_s24  ;;  %s730_s10 = sld [smem:[#allocation8 + $0x6]]  ;;  %v149_v23 = vmax.f32 %v673_v0, %v148_v17 }
  0x43   :  { %v153_v18 = vstv %s695_s26  ;;  %v102_v20 = vsub.f32 %v99_v13, %v101_v11  ;;  %s116_s11 = sadd.f32 1.0, %s115_s7  ;;  %v147_v22 = vmin.f32 %v675_v1, %v146_v16  ;;  %s734_s12 = sld [smem:[#allocation8 + $0x7]]  ;;  %v156_v26 = vmax.f32 %v681_v2, %v155_v19 }
  0x44   :  { %v109_v21 = vsub.f32 %v106_v14, %v108_v15  ;;  %v154_v25 = vmin.f32 %v683_v3, %v153_v18  ;;  %s161_s13 = ssub.f32 %s693_s25, %s687_s23  ;;  %s742_s3 = sld [smem:[#allocation8 + $0x8]]  ;;  %vm87_vm5 = vcmp.lt.f32.partialorder %v683_v3, %v86_v46  ;;  %v842_v54 = vadd.f32 %v225_v49, %v673_v0 }
  0x45   :  { %v103_v27 = vadd.f32 1.0, %v102_v20  ;;  %s117_s14 = smul.f32 %s116_s11, %s114_s9  ;;  %v150_v29 = vsub.f32 %v147_v22, %v149_v23  ;;  %s163_s15 = ssub.f32 %s695_s26, %s689_s24  ;;  %v853_v56 = vadd.f32 %v227_v51, %v681_v2 }
  0x46   :  { %v110_v28 = vadd.f32 1.0, %v109_v21  ;;  %s79_s16 = sfloor.f32 %s697_s2  ;;  %v157_v30 = vsub.f32 %v154_v25, %v156_v26  ;;  %s162_s17 = sadd.f32 1.0, %s161_s13 }
  0x47   :  { %v104_v31 = vmax.f32 %v103_v27, 0.0  ;;  %v118_v33 = vstv %s117_s14  ;;  %v151_v34 = vadd.f32 1.0, %v150_v29  ;;  %s164_s18 = sadd.f32 1.0, %s163_s15  ;;  %s747_s1 = sld [smem:[#allocation8 + $0xa]]  ;;  %v83_v44 = vstv %s79_s16 }
  0x48   :  { %v111_v32 = vmax.f32 %v110_v28, 0.0  ;;  %v119_v35 = vadd.f32 %v118_v33, %v93_v24  ;;  %v158_v36 = vadd.f32 1.0, %v157_v30  ;;  %s243_s20 = ssub.f32 %s708_s29, %s700_s27  ;;  %s751_s21 = sld [smem:[#allocation8 + $0xb]]  ;;  %vm84_vm3 = vcmp.lt.f32.partialorder %v675_v1, %v83_v44 }
  0x49   :  { %v152_v38 = vmax.f32 %v151_v34, 0.0  ;;  %s165_s22 = smul.f32 %s164_s18, %s162_s17  ;;  %s245_s23 = ssub.f32 %s717_s6, %s706_s28  ;;  %vm85_vm4 = vmand %vm82_vm2, %vm84_vm3 }
  0x4a   :  { %v112_v37 = vmul.f32 %v111_v32, %v104_v31  ;;  %v159_v39 = vmax.f32 %v158_v36, 0.0  ;;  %s755_s24 = sadd.f32 1.0, %s243_s20  ;;  %s757_s25 = sld [smem:[#allocation8 + $0xc]]  ;;  %vm815_vm6 = vmand %vm85_vm4, %vm87_vm5 }
  0x4b   :  { %v166_v41 = vstv %s165_s22  ;;  %s759_s26 = sadd.f32 1.0, %s245_s23  ;;  %s761_s29 = sld [smem:[#allocation8 + $0xd]] }
  0x4c   :  { %v120_v40 = vsub.f32 %v119_v35, %v112_v37  ;;  %v160_v42 = vmul.f32 %v159_v39, %v152_v38  ;;  %v167_v43 = vadd.f32 %v166_v41, %v93_v24  ;;  %s247_s30 = smul.f32 0.5, %s755_s24  ;;  %s267_s6 = ssub.f32 %s734_s12, %s724_s8  ;;  %v257_v58 = vstv %s755_s24 }
  0x4d   :  { %s249_s7 = smul.f32 0.5, %s759_s26  ;;  %s269_s9 = ssub.f32 %s742_s3, %s730_s10  ;;  %v260_v59 = vstv %s759_s26 }
  0x4e   :  { %522 = vrcp.f32 %v120_v40  ;;  %v168_v45 = vsub.f32 %v167_v43, %v160_v42  ;;  %s774_s11 = sadd.f32 %s247_s30, %s700_s27  ;;  %s776_s13 = sld [smem:[#allocation8 + $0xf]] }
  0x4f   :  { %s779_s12 = sadd.f32 %s706_s28, %s249_s7  ;;  %s781_s14 = sld [smem:[#allocation8 + $0x10]] }
  0x50   :  { %524 = vrcp.f32 %v168_v45  ;;  %s783_s3 = sadd.f32 1.0, %s267_s6  ;;  %s785_s2 = sld [smem:[#allocation8 + $0x11]]  ;;  %v251_v61 = vstv %s774_s11 }
  0x51   :  { %s790_s27 = sadd.f32 1.0, %s269_s9  ;;  %s792_s28 = sld [smem:[#allocation8 + $0x12]]  ;;  %526 = vrcp.f32 %v702_v6  ;;  %v254_v62 = vstv %s779_s12  ;;  %v614_v6 = vmov 0.0  }
  0x52   :  { %s271_s15 = smul.f32 0.5, %s783_s3  ;;  %s312_s16 = ssub.f32 %s757_s25, %s747_s1  ;;  %528 = vrcp.f32 %v710_v9  ;;  %v281_v63 = vstv %s783_s3 }
  0x53   :  { %s273_s17 = smul.f32 0.5, %s790_s27  ;;  %s314_s18 = ssub.f32 %s761_s29, %s751_s21  ;;  %v284_v2 = vstv %s790_s27 }
  0x54   :  { %s802_s20 = sadd.f32 %s724_s8, %s271_s15  ;;  %s804_s19 = sld [smem:[#allocation8 + $0x14]] }
  0x55   :  { %s807_s0 = sadd.f32 %s730_s10, %s273_s17  ;;  %s809_s22 = sld [smem:[#allocation8 + $0x15]] }
  0x56   :  { %s811_s23 = sadd.f32 1.0, %s312_s16  ;;  %s813_s25 = sld [smem:[#allocation8 + $0x16]]  ;;  %v275_v0 = vstv %s802_s20 }
  0x57   :  { %s820_s8 = sadd.f32 1.0, %s314_s18  ;;  %s822_s10 = sld [smem:[#allocation8 + $0x17]]  ;;  %v278_v1 = vstv %s807_s0 }
  0x58   :  { %v523_v47 = vpop.eup %522  ;;  %s316_s29 = smul.f32 0.5, %s811_s23  ;;  %s336_s30 = ssub.f32 %s785_s2, %s776_s13  ;;  %v326_v4 = vstv %s811_s23 }
  0x59   :  { %v122_v50 = vmul.f32 %v523_v47, %v112_v37  ;;  %s318_s6 = smul.f32 0.5, %s820_s8  ;;  %s338_s7 = ssub.f32 %s792_s28, %s781_s14  ;;  %v329_v5 = vstv %s820_s8 }
  0x5a   :  { %v525_v52 = vpop.eup %524  ;;  %s837_s9 = sadd.f32 %s747_s1, %s316_s29  ;;  %s839_s15 = sld [smem:[#allocation8 + $0x19]] }
  0x5b   :  { %v833_v53 = vsel %vm815_vm6, %v122_v50, -1.0  ;;  %v170_v55 = vmul.f32 %v525_v52, %v160_v42  ;;  %s848_s2 = sadd.f32 %s751_s21, %s318_s6  ;;  %s850_s1 = sld [smem:[#allocation8 + $0x1a]]  ;;  %v919_v22 = vpop.eup %526 }
  0x5c   :  { %126 = vmax.xlane.f32.xlu0 %v833_v53  ;;  %vm124_vm7 = vcmp.gt.f32.partialorder %v833_v53, -inf  ;;  %s858_s28 = sadd.f32 1.0, %s336_s30  ;;  %s860_s21 = sld [smem:[#allocation8 + $0x1b]]  ;;  %v320_v3 = vstv %s837_s9  ;;  %v928_v27 = vpop.eup %528 }
  0x5d   :  { %v125_v57 = vsel %vm124_vm7, %v833_v53, -inf  ;;  %v864_v60 = vsel %vm815_vm6, %v170_v55, -1.0  ;;  %s869_s16 = sadd.f32 1.0, %s338_s7  ;;  %s871_s24 = sld [smem:[#allocation8 + $0x1c]]  ;;  %v323_v8 = vstv %s848_s2 }
  0x5e   :  { %s340_s26 = smul.f32 0.5, %s858_s28  ;;  %s382_s17 = ssub.f32 %s813_s25, %s804_s19  ;;  %vm172_vm8 = vcmp.gt.f32.partialorder %v864_v60, %v125_v57  ;;  %v350_v10 = vstv %s858_s28 }
  0x5f   :  { %s342_s11 = smul.f32 0.5, %s869_s16  ;;  %s384_s12 = ssub.f32 %s822_s10, %s809_s22  ;;  %v174_v7 = vsel %vm172_vm8, 1.0, %v614_v6  ;;  %v893_v9 = vsel %vm172_vm8, %v864_v60, %v125_v57  ;;  %v353_v11 = vstv %s869_s16 }
  0x60   :  { %175 = vmax.xlane.f32.xlu0 %v864_v60  ;;  %s890_s3 = sadd.f32 %s776_s13, %s340_s26  ;;  %vm233_vm9 = vcmp.eq.f32.partialorder %v174_v7, 0.0  ;;  %vm236_vm10 = vcmp.eq.f32.partialorder %v174_v7, 1.0  ;;  %vm191_vm11 = vcmp.lt.f32.partialorder %v893_v9, 0.3  ;;  %vm197_vm2 = vcmp.ge.f32.partialorder %v893_v9, 0.7 }
  0x61   :  { %s896_s27 = sadd.f32 %s781_s14, %s342_s11  ;;  %v901_v12 = vsel %vm233_vm9, 1.0, %v614_v6  ;;  %v904_v13 = vsel %vm236_vm10, 1.0, %v614_v6  ;;  %vm192_vm12 = vmand %vm815_vm6, %vm191_vm11 }
  0x62   :  { %v344_v14 = vstv %s890_s3  ;;  %s907_s13 = sadd.f32 1.0, %s382_s17  ;;  %v252_v15 = vmul.f32 %v901_v12, %v251_v61  ;;  %v255_v16 = vmul.f32 %v901_v12, %v254_v62  ;;  %v258_v17 = vmul.f32 %v901_v12, %v257_v58  ;;  %vm198_vm3 = vmand %vm815_vm6, %vm197_vm2 }
  0x63   :  { %v347_v18 = vstv %s896_s27  ;;  %s913_s14 = sadd.f32 1.0, %s384_s12  ;;  %v261_v19 = vmul.f32 %v901_v12, %v260_v59  ;;  %v276_v20 = vmul.f32 %v904_v13, %v275_v0  ;;  %v279_v21 = vmul.f32 %v904_v13, %v278_v1 }
  0x64   :  { %s386_s18 = smul.f32 0.5, %s907_s13  ;;  %v396_v23 = vstv %s907_s13  ;;  %s406_s20 = ssub.f32 %s860_s21, %s839_s15  ;;  %v282_v24 = vmul.f32 %v904_v13, %v281_v63  ;;  %v285_v25 = vmul.f32 %v904_v13, %v284_v2  ;;  %v321_v26 = vmul.f32 %v901_v12, %v320_v3 }
  0x65   :  { %s388_s0 = smul.f32 0.5, %s913_s14  ;;  %v399_v28 = vstv %s913_s14  ;;  %s408_s23 = ssub.f32 %s871_s24, %s850_s1  ;;  %v277_v29 = vadd.f32 %v276_v20, %v252_v15  ;;  %v280_v30 = vadd.f32 %v279_v21, %v255_v16  ;;  %v324_v31 = vmul.f32 %v901_v12, %v323_v8 }
  0x66   :  { %s936_s25 = sadd.f32 %s804_s19, %s386_s18  ;;  %v283_v32 = vadd.f32 %v282_v24, %v258_v17  ;;  %v286_v33 = vadd.f32 %v285_v25, %v261_v19  ;;  %v327_v34 = vmul.f32 %v901_v12, %v326_v4  ;;  %v330_v35 = vmul.f32 %v901_v12, %v329_v5 }
  0x67   :  { %s941_s8 = sadd.f32 %s809_s22, %s388_s0  ;;  %v287_v36 = vsub.f32 %v277_v29, %v842_v54  ;;  %v289_v37 = vsub.f32 %v280_v30, %v853_v56  ;;  %v345_v38 = vmul.f32 %v904_v13, %v344_v14  ;;  %v348_v39 = vmul.f32 %v904_v13, %v347_v18 }
  0x68   :  { %v390_v40 = vstv %s936_s25  ;;  %s948_s19 = sadd.f32 1.0, %s406_s20  ;;  %v291_v41 = vmul.f32 %v919_v22, %v283_v32  ;;  %v294_v42 = vmul.f32 %v928_v27, %v286_v33  ;;  %v351_v43 = vmul.f32 %v904_v13, %v350_v10 }
  0x69   :  { %v393_v44 = vstv %s941_s8  ;;  %s954_s22 = sadd.f32 1.0, %s408_s23  ;;  %v288_v45 = vmul.f32 %v919_v22, %v287_v36  ;;  %v290_v46 = vmul.f32 %v928_v27, %v289_v37  ;;  %v346_v47 = vadd.f32 %v345_v38, %v321_v26 }
  0x6a   :  { %s410_s10 = smul.f32 0.5, %s948_s19  ;;  %v420_v49 = vstv %s948_s19  ;;  %530 = vlog2.f32 %v291_v41  ;;  %v349_v50 = vadd.f32 %v348_v39, %v324_v31  ;;  %v352_v51 = vadd.f32 %v351_v43, %v327_v34 }
  0x6b   :  { %s412_s29 = smul.f32 0.5, %s954_s22  ;;  %v423_v52 = vstv %s954_s22  ;;  %532 = vlog2.f32 %v294_v42  ;;  %v297_v55 = vsel %vm815_vm6, %v288_v45, 0.0  ;;  %v299_v57 = vsel %vm815_vm6, %v290_v46, 0.0 }
  0x6c   :  { %s411_s30 = sadd.f32 %s839_s15, %s410_s10  ;;  %298 = vst [vmem:[%s1079_s5] sm:$0xff] %v297_v55  ;;  %481 = vst [vmem:[%s1079_s5 + $0x18] sm:$0xff] %v299_v57  ;;  %v354_v58 = vmul.f32 %v904_v13, %v353_v11  ;;  %v356_v59 = vsub.f32 %v346_v47, %v842_v54  ;;  %v358_v61 = vsub.f32 %v349_v50, %v853_v56  ;;  %v615_v20 = vmov -1.0  }
  0x6d   :  { %v360_v62 = vmul.f32 %v919_v22, %v352_v51  ;;  %s413_s28 = sadd.f32 %s850_s1, %s412_s29  ;;  %v391_v63 = vmul.f32 %v901_v12, %v390_v40  ;;  %v394_v0 = vmul.f32 %v901_v12, %v393_v44  ;;  %v397_v1 = vmul.f32 %v901_v12, %v396_v23 }
  0x6e   :  { %v400_v2 = vmul.f32 %v901_v12, %v399_v28  ;;  %v414_v3 = vstv %s411_s30  ;;  %v355_v4 = vadd.f32 %v354_v58, %v330_v35  ;;  %v357_v5 = vmul.f32 %v919_v22, %v356_v59 }
  0x6f   :  { %v359_v7 = vmul.f32 %v928_v27, %v358_v61  ;;  %v417_v8 = vstv %s413_s28  ;;  %534 = vlog2.f32 %v360_v62  ;;  %v415_v10 = vmul.f32 %v904_v13, %v414_v3 }
  0x70   :  { %v421_v11 = vmul.f32 %v904_v13, %v420_v49  ;;  %v363_v14 = vmul.f32 %v928_v27, %v355_v4  ;;  %v366_v12 = vsel %vm815_vm6, %v357_v5, 0.0  ;;  %v418_v16 = vmul.f32 %v904_v13, %v417_v8 }
  0x71   :  { %v369_v15 = vsel %vm815_vm6, %v359_v7, 0.0  ;;  %492 = vst [vmem:[%s1079_s5 + $0x8] sm:$0xff] %v366_v12  ;;  %v416_v17 = vadd.f32 %v415_v10, %v391_v63  ;;  %v424_v19 = vmul.f32 %v904_v13, %v423_v52  ;;  %v1003_v21 = vsel %vm192_vm12, 0.0, %v615_v20 }
  0x72   :  { %493 = vst [vmem:[%s1079_s5 + $0x20] sm:$0xff] %v369_v15  ;;  %v422_v18 = vadd.f32 %v421_v11, %v397_v1  ;;  %536 = vlog2.f32 %v363_v14  ;;  %v419_v23 = vadd.f32 %v418_v16, %v394_v0  ;;  %vm200_vm13 = vcmp.ge.f32.partialorder %v1003_v21, 0.0 }
  0x73   :  { %v425_v24 = vadd.f32 %v424_v19, %v400_v2  ;;  %v426_v25 = vsub.f32 %v416_v17, %v842_v54  ;;  %v469_v28 = vsel %vm200_vm13, 1.0, %v614_v6 }
  0x74   :  { %v430_v26 = vmul.f32 %v919_v22, %v422_v18  ;;  %v531_v29 = vpop.eup %530  ;;  %v428_v30 = vsub.f32 %v419_v23, %v853_v56  ;;  %203 = vadd.xlane.f32.xlu1 %v469_v28 }
  0x75   :  { %v533_v31 = vpop.eup %532  ;;  %v293_v13 = vmul.f32 0.6931472, %v531_v29  ;;  %v427_v32 = vmul.f32 %v919_v22, %v426_v25  ;;  %v433_v33 = vmul.f32 %v928_v27, %v425_v24 }
  0x76   :  { %538 = vlog2.f32 %v430_v26  ;;  %v296_v34 = vmul.f32 0.6931472, %v533_v31  ;;  %v429_v35 = vmul.f32 %v928_v27, %v428_v30 }
  0x77   :  { %v302_v54 = vsel %vm815_vm6, %v293_v13, 0.0  ;;  %540 = vlog2.f32 %v433_v33  ;;  %v436_v36 = vsel %vm815_vm6, %v427_v32, 0.0 }
  0x78   :  { %482 = vst [vmem:[%s1079_s5 + $0x30] sm:$0xff] %v302_v54  ;;  %v305_v56 = vsel %vm815_vm6, %v296_v34, 0.0  ;;  %504 = vst [vmem:[%s1079_s5 + $0x10] sm:$0xff] %v436_v36  ;;  %v439_v22 = vsel %vm815_vm6, %v429_v35, 0.0 }
  0x79   :  { %v535_v27 = vpop.eup %534  ;;  %483 = vst [vmem:[%s1079_s5 + $0x48] sm:$0xff] %v305_v56  ;;  %505 = vst [vmem:[%s1079_s5 + $0x28] sm:$0xff] %v439_v22 }
  0x7a   :  { %v362_v37 = vmul.f32 0.6931472, %v535_v27 }
  0x7c   :  { %v537_v38 = vpop.eup %536  ;;  %v372_v39 = vsel %vm815_vm6, %v362_v37, 0.0 }
  0x7d   :  { %v365_v40 = vmul.f32 0.6931472, %v537_v38  ;;  %494 = vst [vmem:[%s1079_s5 + $0x38] sm:$0xff] %v372_v39 }
  0x7f   :  { %v375_v42 = vsel %vm815_vm6, %v365_v40, 0.0 }
  0x80   :  { %v539_v41 = vpop.eup %538  ;;  %495 = vst [vmem:[%s1079_s5 + $0x50] sm:$0xff] %v375_v42 }
  0x81   :  { %v432_v43 = vmul.f32 0.6931472, %v539_v41  ;;  %v541_v44 = vpop.eup %540 }
  0x82   :  { %v435_v45 = vmul.f32 0.6931472, %v541_v44 }
  0x83   :  { %v442_v46 = vsel %vm815_vm6, %v432_v43, 0.0 }
  0x84   :  { %506 = vst [vmem:[%s1079_s5 + $0x40] sm:$0xff] %v442_v46  ;;  %v445_v47 = vsel %vm815_vm6, %v435_v45, 0.0 }
  0x85   :  { %507 = vst [vmem:[%s1079_s5 + $0x58] sm:$0xff] %v445_v47 }
  0xe9   :  { %v127_v49 = vpop.xlane.xlu0 %126 }
  0xea   :  { %v128_v50 = vrot.slane %v127_v49, 4 }
  0xec   :  { %v129_v51 = vmax.f32 %v127_v49, %v128_v50 }
  0xed   :  { %v176_v52 = vpop.xlane.xlu0 %175 }
  0xee   :  { %v130_v55 = vrot.slane %v129_v51, 2  ;;  %v177_v57 = vrot.slane %v176_v52, 4 }
  0xf0   :  { %v178_v58 = vmax.f32 %v176_v52, %v177_v57  ;;  %v131_v59 = vmax.f32 %v129_v51, %v130_v55 }
  0xf2   :  { %v179_v61 = vrot.slane %v178_v58, 2  ;;  %v132_v62 = vrot.slane %v131_v59, 1 }
  0xf4   :  { %v180_v63 = vmax.f32 %v178_v58, %v179_v61  ;;  %v133_v0 = vmax.f32 %v131_v59, %v132_v62 }
  0xf6   :  { %508 = vpush %v133_v0  ;;  %v181_v1 = vrot.slane %v180_v63, 1 }
  0xf8   :  { %v182_v2 = vmax.f32 %v180_v63, %v181_v1 }
  0xfa   :  { %510 = vpush %v182_v2 }
 0x101   :  { %v204_v3 = vpop.xlane.xlu1 %203 }
 0x102   :  { %v205_v4 = vrot.slane %v204_v3, 4 }
 0x104   :  { %v206_v5 = vadd.f32 %v205_v4, %v204_v3 }
 0x106   :  { %v207_v7 = vrot.slane %v206_v5, 2 }
 0x108   :  { %v208_v8 = vadd.f32 %v207_v7, %v206_v5 }
 0x10a   :  { %v209_v10 = vrot.slane %v208_v8, 1 }
 0x10c   :  { %v210_v11 = vadd.f32 %v209_v10, %v208_v8 }
 0x10e   :  { %512 = vpush %v210_v11 }
 0x127   :  { %s509_s5 = spop %508 }
 0x128   :  { %v135_v14 = vstv %s509_s5 }
 0x129   :  { %vm136_vm14 = vcmp.eq.f32.partialorder %v135_v14, 0.0 }
 0x12a   :  { %v137_v12 = vsel %vm136_vm14, 1e-05, %v135_v14 }
 0x12b   :  { %s511_s22 = spop %510  ;;  %vm138_vm15 = vcmp.eq.f32.partialorder %v833_v53, %v137_v12 }
 0x12c   :  { %v184_v15 = vstv %s511_s22  ;;  %v463_v17 = vsel %vm138_vm15, 1.0, %v614_v6 }
 0x12d   :  { %vm185_vm0 = vcmp.eq.f32.partialorder %v184_v15, 0.0 }
 0x12e   :  { %v186_v16 = vsel %vm185_vm0, 1e-05, %v184_v15 }
 0x12f   :  { %vm187_vm1 = vcmp.eq.f32.partialorder %v864_v60, %v186_v16 }
 0x130   :  { %v468_v18 = vsel %vm187_vm1, 1.0, %v614_v6 }
 0x131   :  { %v190_v19 = vadd.f32 %v468_v18, %v463_v17 }
 0x133   :  { %vm194_vm4 = vcmp.gt.f32.partialorder %v190_v19, 0.0 }
 0x134   :  { %vm195_vm5 = vmand %vm815_vm6, %vm194_vm4  ;;  %vm218_vm6 = vcmp.eq.f32.partialorder %v1003_v21, 0.0 }
 0x135   :  { %v196_v53 = vsel %vm195_vm5, 1.0, %v1003_v21 }
 0x136   :  { %v199_v20 = vsel %vm198_vm3, 1.0, %v196_v53 }
 0x137   :  { %vm216_vm7 = vcmp.eq.f32.partialorder %v199_v20, 1.0  ;;  %220 = vst [vmem:[%s1078_s4] sm:$0xff] %v199_v20 }
 0x138   :  { %v217_v60 = vsel %vm216_vm7, 1.0, %v614_v6 }
 0x139   :  { %470 = vst [vmem:[%s1078_s4 + $0x8] sm:$0xff] %v217_v60 }
 0x13f   :  { %s513_s7 = spop %512 }
 0x140   :  { %v212_v9 = vstv %s513_s7 }
 0x141   :  { %v213_v23 = vmax.f32 %v212_v9, 1.0 }
 0x143   :  { %542 = vrcp.f32 %v213_v23 }
 0x14d   :  { %v543_v48 = vpop.eup %542 }
 0x14e   :  { %v219_v24 = vsel %vm218_vm6, %v543_v48, 0.0 }
 0x14f   :  { %471 = vst [vmem:[%s1078_s4 + $0x10] sm:$0xff] %v219_v24 }
 0x150   :  { %456 = vsyncpa [#allocation3], 1 }
 0x151   :  { %457 = vsyncpa [#allocation4], 1 }
 0x152   :  { %458 = vsyncpa [#allocation7], 1 }

</bundles_post_ra>
